<compile_context>
chip_gen: v6e
topology: v6e:2x2x1
jax: 0.10.0
libtpu: 0.0.40
codegen_flags: <defaults>
</compile_context>

<pallas_src>
import functools

import jax
import jax.numpy as jnp
from jax.experimental import pallas as pl
from jax.experimental.pallas import tpu as pltpu


def mv_lstm_kernel(x_ref, wih0_ref, whh0_ref, b0_ref,
                   w1ih_ref, w1hh_ref, b1_ref, wfc_ref, bfc_ref,
                   out_ref, xproj_ref):
    H = whh0_ref.shape[0]
    S = wfc_ref.shape[0]
    BLOCK_B = out_ref.shape[0]
    mdtype = wih0_ref.dtype          # MXU operand dtype (f32 or bf16)

    # ---- phase 1: layer-0 input projection for ALL timesteps in one MXU call,
    #      streamed through VMEM scratch (keeps vreg pressure to the loop carries).
    x_flat = x_ref[0]                                            # (S*BLOCK_B, F)
    xproj_ref[...] = (jnp.dot(x_flat, wih0_ref[...],
                              preferred_element_type=jnp.float32)
                      + b0_ref[...])                             # f32 (S*BLOCK_B, 4H)

    whh0 = whh0_ref[...]                                         # (H, 4H)
    w1ih = w1ih_ref[...]                                         # (H, 4H)
    w1hh = w1hh_ref[...]                                         # (H, 4H)
    b1 = jnp.broadcast_to(b1_ref[...], (BLOCK_B, 4 * H))         # hoisted broadcast
    wfc = wfc_ref[...]                                           # (S, 1, H)

    def apply_gates(gates, c):
        # gate order pre-permuted in the wrapper to (i, f, o, g):
        # one contiguous sigmoid over 3H lanes, one tanh over H lanes.
        ifo = jax.nn.sigmoid(gates[:, :3 * H])
        g = jnp.tanh(gates[:, 3 * H:])
        i = ifo[:, 0 * H:1 * H]
        f = ifo[:, 1 * H:2 * H]
        o = ifo[:, 2 * H:3 * H]
        c_new = f * c + i * g
        h_new = o * jnp.tanh(c_new)
        return h_new, c_new

    # ---- phase 2: serial recurrence; state stays in vregs (f32 throughout).
    h1 = jnp.zeros((BLOCK_B, H), jnp.float32)
    c1 = jnp.zeros((BLOCK_B, H), jnp.float32)
    h2 = jnp.zeros((BLOCK_B, H), jnp.float32)
    c2 = jnp.zeros((BLOCK_B, H), jnp.float32)
    acc = jnp.zeros((BLOCK_B, H), jnp.float32)   # lane-dense fc accumulator

    for t in range(S):   # S is static and tiny -> fully unrolled at trace time
        # layer-1 recurrent contribution: depends only on h2_{t-1}; independent
        # of layer 0 of this step, so the scheduler can issue it early.
        rec1 = jnp.dot(h2.astype(mdtype), w1hh,
                       preferred_element_type=jnp.float32)

        # layer 0: only the recurrent matmul remains on the critical path.
        g0 = (xproj_ref[t * BLOCK_B:(t + 1) * BLOCK_B, :]
              + jnp.dot(h1.astype(mdtype), whh0,
                        preferred_element_type=jnp.float32))
        h1, c1 = apply_gates(g0, c1)

        # layer 1: un-fused weights -> no per-step lane concat.
        g1 = (jnp.dot(h1.astype(mdtype), w1ih,
                      preferred_element_type=jnp.float32)
              + rec1 + b1)
        h2, c2 = apply_gates(g1, c2)

        # final-Linear contribution, kept lane-dense (VPU mul-add only).
        acc = acc + h2 * wfc[t]

    # ---- phase 3: one cross-lane reduction + bias + single (BLOCK_B, 1) store.
    out_ref[...] = jnp.sum(acc, axis=-1, keepdims=True) + bfc_ref[0, 0]


def _permute_gate_cols(w, H):
    """Permute 4H gate columns from PyTorch (i,f,g,o) order to (i,f,o,g)."""
    i = w[..., 0 * H:1 * H]
    f = w[..., 1 * H:2 * H]
    g = w[..., 2 * H:3 * H]
    o = w[..., 3 * H:4 * H]
    return jnp.concatenate([i, f, o, g], axis=-1)


def mv_lstm_forward(x, params, hidden_size, *, matmul_dtype=jnp.float32):
    """x: (B, S, F) float32; params in PyTorch layout. Returns (B, 1) float32."""
    B, S, F = x.shape
    H = hidden_size

    # --- batch padding / blocking: sublane-aligned block, <=128 rows per block.
    if B >= 128:
        block_b = 128
    else:
        block_b = ((B + 7) // 8) * 8
    b_pad = ((B + block_b - 1) // block_b) * block_b
    num_blocks = b_pad // block_b

    # blocked time-major rows: (num_blocks, S*block_b, F);
    # row t*block_b + b of block nb holds timestep t of batch elem nb*block_b+b.
    x_p = jnp.pad(x, ((0, b_pad - B), (0, 0), (0, 0)))
    x_blk = (x_p.reshape(num_blocks, block_b, S, F)
                .transpose(0, 2, 1, 3)
                .reshape(num_blocks, S * block_b, F)
                .astype(matmul_dtype))

    # --- weights (gate-permuted); matrices in matmul_dtype, biases stay f32.
    wih0 = _permute_gate_cols(params["w_ih_l0"].T, H).astype(matmul_dtype)   # (F, 4H)
    whh0 = _permute_gate_cols(params["w_hh_l0"].T, H).astype(matmul_dtype)   # (H, 4H)
    b0 = _permute_gate_cols(
        (params["b_ih_l0"] + params["b_hh_l0"]).reshape(1, 4 * H), H)        # (1, 4H)
    w1ih = _permute_gate_cols(params["w_ih_l1"].T, H).astype(matmul_dtype)   # (H, 4H)
    w1hh = _permute_gate_cols(params["w_hh_l1"].T, H).astype(matmul_dtype)   # (H, 4H)
    b1 = _permute_gate_cols(
        (params["b_ih_l1"] + params["b_hh_l1"]).reshape(1, 4 * H), H)        # (1, 4H)
    wfc = params["fc_w"].reshape(S, 1, H)                                    # (S, 1, H)
    bfc = params["fc_b"].reshape(1, 1)                                       # (1, 1)

    def full_spec(arr):
        nd = arr.ndim
        return pl.BlockSpec(arr.shape, lambda i, _nd=nd: (0,) * _nd)

    out = pl.pallas_call(
        mv_lstm_kernel,
        out_shape=jax.ShapeDtypeStruct((b_pad, 1), jnp.float32),
        grid_spec=pltpu.PrefetchScalarGridSpec(
            num_scalar_prefetch=0,
            grid=(num_blocks,),
            in_specs=[
                pl.BlockSpec((1, S * block_b, F), lambda i: (i, 0, 0)),   # x block
                full_spec(wih0),                                          # W_ih l0
                full_spec(whh0),                                          # W_hh l0
                full_spec(b0),                                            # bias l0
                full_spec(w1ih),                                          # W_ih l1
                full_spec(w1hh),                                          # W_hh l1
                full_spec(b1),                                            # bias l1
                full_spec(wfc),                                           # fc weight
                pl.BlockSpec(memory_space=pltpu.MemorySpace.SMEM),        # fc bias
            ],
            out_specs=pl.BlockSpec((block_b, 1), lambda i: (i, 0)),
            scratch_shapes=[pltpu.VMEM((S * block_b, 4 * H), jnp.float32)],
        ),
        compiler_params=pltpu.CompilerParams(
            dimension_semantics=("parallel",),
            vmem_limit_bytes=32 * 1024 * 1024,
        ),
    )(x_blk, wih0, whh0, b0, w1ih, w1hh, b1, wfc, bfc)

    return out[:B]


def mv_lstm_ref(x, params):
    """Pure-JAX reference mirroring PyTorch nn.LSTM + nn.Linear semantics."""
    B, S, F = x.shape
    H = params["w_hh_l0"].shape[1]

    def cell(x_t, h, c, w_ih, w_hh, b_ih, b_hh):
        gates = x_t @ w_ih.T + b_ih + h @ w_hh.T + b_hh
        i, f, g, o = jnp.split(gates, 4, axis=-1)
        i, f, o = jax.nn.sigmoid(i), jax.nn.sigmoid(f), jax.nn.sigmoid(o)
        g = jnp.tanh(g)
        c = f * c + i * g
        h = o * jnp.tanh(c)
        return h, c

    h1 = jnp.zeros((B, H), jnp.float32)
    c1 = jnp.zeros((B, H), jnp.float32)
    h2 = jnp.zeros((B, H), jnp.float32)
    c2 = jnp.zeros((B, H), jnp.float32)
    outs = []
    for t in range(S):
        h1, c1 = cell(x[:, t], h1, c1, params["w_ih_l0"], params["w_hh_l0"],
                      params["b_ih_l0"], params["b_hh_l0"])
        h2, c2 = cell(h1, h2, c2, params["w_ih_l1"], params["w_hh_l1"],
                      params["b_ih_l1"], params["b_hh_l1"])
        outs.append(h2)
    lstm_out = jnp.stack(outs, axis=1)            # (B, S, H)
    flat = lstm_out.reshape(B, S * H)
    return flat @ params["fc_w"].T + params["fc_b"]


def init_params(key, n_features, seq_len, hidden):
    """Deterministic params matching PyTorch LSTM/Linear init ranges."""
    k = 1.0 / jnp.sqrt(hidden)
    names_shapes = [
        ("w_ih_l0", (4 * hidden, n_features)),
        ("w_hh_l0", (4 * hidden, hidden)),
        ("b_ih_l0", (4 * hidden,)),
        ("b_hh_l0", (4 * hidden,)),
        ("w_ih_l1", (4 * hidden, hidden)),
        ("w_hh_l1", (4 * hidden, hidden)),
        ("b_ih_l1", (4 * hidden,)),
        ("b_hh_l1", (4 * hidden,)),
        ("fc_w", (1, hidden * seq_len)),
        ("fc_b", (1,)),
    ]
    keys = jax.random.split(key, len(names_shapes))
    params = {}
    for (name, shape), kk in zip(names_shapes, keys):
        params[name] = jax.random.uniform(kk, shape, jnp.float32, minval=-k, maxval=k)
    return params


if __name__ == "__main__":
    B, S, F, H = 2, 8, 4, 32   # batch, seq_length, n_features, hidden_size

    key = jax.random.PRNGKey(0)
    kx, kp = jax.random.split(key)
    x = jax.random.normal(kx, (B, S, F), jnp.float32)
    params = init_params(kp, F, S, H)

    ref = mv_lstm_ref(x, params)

    # f32 MXU operands (exact-ish match to the reference).
    fwd_f32 = jax.jit(functools.partial(mv_lstm_forward, hidden_size=H))
    out = jax.block_until_ready(fwd_f32(x, params))
    assert out.shape == (B, 1), out.shape
    assert jnp.allclose(out, ref, rtol=2e-3, atol=2e-3), (out, ref)

    # bf16 MXU-operand variant (weights/x/h casts only; gate math stays f32).
    fwd_bf16 = jax.jit(functools.partial(mv_lstm_forward, hidden_size=H,
                                         matmul_dtype=jnp.bfloat16))
    out_bf16 = jax.block_until_ready(fwd_bf16(x, params))
    assert out_bf16.shape == (B, 1), out_bf16.shape
    assert jnp.allclose(out_bf16, ref, rtol=5e-2, atol=5e-2), (out_bf16, ref)

    print("KERNEL_OK")
</pallas_src>

<mosaic_0001>
module attributes {stable_mosaic.version = 11 : i64} {
  func.func @mv_lstm_kernel(%arg0: i32, %arg1: memref<1x64x4xf32, #tpu.memory_space<vmem>>, %arg2: memref<4x128xf32, #tpu.memory_space<vmem>>, %arg3: memref<32x128xf32, #tpu.memory_space<vmem>>, %arg4: memref<1x128xf32, #tpu.memory_space<vmem>>, %arg5: memref<32x128xf32, #tpu.memory_space<vmem>>, %arg6: memref<32x128xf32, #tpu.memory_space<vmem>>, %arg7: memref<1x128xf32, #tpu.memory_space<vmem>>, %arg8: memref<8x1x32xf32, #tpu.memory_space<vmem>>, %arg9: memref<1x1xf32, #tpu.memory_space<smem>>, %arg10: memref<8x1xf32, #tpu.memory_space<vmem>>, %arg11: memref<64x128xf32, #tpu.memory_space<vmem>>) attributes {dimension_semantics = [#tpu.dimension_semantics<parallel>], iteration_bounds = array<i64: 1>, scalar_prefetch = 0 : i64, scratch_operands = 1 : i64, tpu.core_type = #tpu.core_type<tc>, window_params = [{transform_indices = @transform_0, window_bounds = array<i64: 1, 64, 4>}, {pipeline_mode = #tpu.pipeline_mode<synchronous>, transform_indices = @transform_1, window_bounds = array<i64: 4, 128>}, {pipeline_mode = #tpu.pipeline_mode<synchronous>, transform_indices = @transform_2, window_bounds = array<i64: 32, 128>}, {pipeline_mode = #tpu.pipeline_mode<synchronous>, transform_indices = @transform_3, window_bounds = array<i64: 1, 128>}, {pipeline_mode = #tpu.pipeline_mode<synchronous>, transform_indices = @transform_4, window_bounds = array<i64: 32, 128>}, {pipeline_mode = #tpu.pipeline_mode<synchronous>, transform_indices = @transform_5, window_bounds = array<i64: 32, 128>}, {pipeline_mode = #tpu.pipeline_mode<synchronous>, transform_indices = @transform_6, window_bounds = array<i64: 1, 128>}, {pipeline_mode = #tpu.pipeline_mode<synchronous>, transform_indices = @transform_7, window_bounds = array<i64: 8, 1, 32>}, {transform_indices = @transform_8, window_bounds = array<i64: 1, 1>}, {transform_indices = @transform_9, window_bounds = array<i64: 8, 1>}]} {
    %c0 = arith.constant 0 : index
    %c0_0 = arith.constant 0 : index
    %c0_1 = arith.constant 0 : index
    %0 = vector.load %arg1[%c0, %c0_0, %c0_1] : memref<1x64x4xf32, #tpu.memory_space<vmem>>, vector<1x64x4xf32>
    %1 = vector.shape_cast %0 : vector<1x64x4xf32> to vector<64x4xf32>
    %c0_2 = arith.constant 0 : index
    %c0_3 = arith.constant 0 : index
    %2 = vector.load %arg2[%c0_2, %c0_3] : memref<4x128xf32, #tpu.memory_space<vmem>>, vector<4x128xf32>
    %cst = arith.constant dense<0.000000e+00> : vector<64x128xf32>
    %3 = tpu.matmul %1, %2, %cst {dimension_numbers = #tpu.dot_dimension_numbers<[1], [0], [0], [1], [0, 0, 1, 1], [], []>} : vector<64x4xf32>, vector<4x128xf32>, vector<64x128xf32> -> vector<64x128xf32>
    %c0_4 = arith.constant 0 : index
    %c0_5 = arith.constant 0 : index
    %4 = vector.load %arg4[%c0_4, %c0_5] : memref<1x128xf32, #tpu.memory_space<vmem>>, vector<1x128xf32>
    %5 = vector.broadcast %4 : vector<1x128xf32> to vector<64x128xf32>
    %6 = arith.addf %3, %5 : vector<64x128xf32>
    %c0_6 = arith.constant 0 : index
    %c0_7 = arith.constant 0 : index
    %7 = vector.load %arg11[%c0_6, %c0_7] : memref<64x128xf32, #tpu.memory_space<vmem>>, vector<64x128xf32>
    tpu.vector_store %arg11[%c0_6, %c0_7], %6 {strides = array<i32>} : memref<64x128xf32, #tpu.memory_space<vmem>>, vector<64x128xf32>,
    %c0_8 = arith.constant 0 : index
    %c0_9 = arith.constant 0 : index
    %8 = vector.load %arg3[%c0_8, %c0_9] : memref<32x128xf32, #tpu.memory_space<vmem>>, vector<32x128xf32>
    %c0_10 = arith.constant 0 : index
    %c0_11 = arith.constant 0 : index
    %9 = vector.load %arg5[%c0_10, %c0_11] : memref<32x128xf32, #tpu.memory_space<vmem>>, vector<32x128xf32>
    %c0_12 = arith.constant 0 : index
    %c0_13 = arith.constant 0 : index
    %10 = vector.load %arg6[%c0_12, %c0_13] : memref<32x128xf32, #tpu.memory_space<vmem>>, vector<32x128xf32>
    %c0_14 = arith.constant 0 : index
    %c0_15 = arith.constant 0 : index
    %11 = vector.load %arg7[%c0_14, %c0_15] : memref<1x128xf32, #tpu.memory_space<vmem>>, vector<1x128xf32>
    %12 = vector.shape_cast %11 : vector<1x128xf32> to vector<1x128xf32>
    %13 = vector.broadcast %12 : vector<1x128xf32> to vector<8x128xf32>
    %c0_16 = arith.constant 0 : index
    %c0_17 = arith.constant 0 : index
    %c0_18 = arith.constant 0 : index
    %14 = vector.load %arg8[%c0_16, %c0_17, %c0_18] : memref<8x1x32xf32, #tpu.memory_space<vmem>>, vector<8x1x32xf32>
    %cst_19 = arith.constant 0.000000e+00 : f32
    %15 = vector.broadcast %cst_19 : f32 to vector<8x32xf32>
    %cst_20 = arith.constant 0.000000e+00 : f32
    %16 = vector.broadcast %cst_20 : f32 to vector<8x32xf32>
    %cst_21 = arith.constant 0.000000e+00 : f32
    %17 = vector.broadcast %cst_21 : f32 to vector<8x32xf32>
    %cst_22 = arith.constant 0.000000e+00 : f32
    %18 = vector.broadcast %cst_22 : f32 to vector<8x32xf32>
    %cst_23 = arith.constant 0.000000e+00 : f32
    %19 = vector.broadcast %cst_23 : f32 to vector<8x32xf32>
    %cst_24 = arith.constant dense<0.000000e+00> : vector<8x128xf32>
    %20 = tpu.matmul %17, %10, %cst_24 {dimension_numbers = #tpu.dot_dimension_numbers<[1], [0], [0], [1], [0, 0, 1, 1], [], []>} : vector<8x32xf32>, vector<32x128xf32>, vector<8x128xf32> -> vector<8x128xf32>
    %c0_25 = arith.constant 0 : index
    %c0_26 = arith.constant 0 : index
    %21 = vector.load %arg11[%c0_25, %c0_26] : memref<64x128xf32, #tpu.memory_space<vmem>>, vector<8x128xf32>
    %cst_27 = arith.constant dense<0.000000e+00> : vector<8x128xf32>
    %22 = tpu.matmul %15, %8, %cst_27 {dimension_numbers = #tpu.dot_dimension_numbers<[1], [0], [0], [1], [0, 0, 1, 1], [], []>} : vector<8x32xf32>, vector<32x128xf32>, vector<8x128xf32> -> vector<8x128xf32>
    %23 = arith.addf %21, %22 : vector<8x128xf32>
    %24 = vector.extract_strided_slice %23 {offsets = [0, 0], sizes = [8, 96], strides = [1, 1]} : vector<8x128xf32> to vector<8x96xf32>
    %25 = arith.negf %24 : vector<8x96xf32>
    %26 = math.exp %25 : vector<8x96xf32>
    %cst_28 = arith.constant 1.000000e+00 : f32
    %27 = vector.broadcast %cst_28 : f32 to vector<8x96xf32>
    %28 = arith.addf %27, %26 : vector<8x96xf32>
    %29 = arith.divf %27, %28 : vector<8x96xf32>
    %30 = vector.extract_strided_slice %23 {offsets = [0, 96], sizes = [8, 32], strides = [1, 1]} : vector<8x128xf32> to vector<8x32xf32>
    %31 = math.tanh %30 : vector<8x32xf32>
    %32 = vector.extract_strided_slice %29 {offsets = [0, 0], sizes = [8, 32], strides = [1, 1]} : vector<8x96xf32> to vector<8x32xf32>
    %33 = vector.extract_strided_slice %29 {offsets = [0, 32], sizes = [8, 32], strides = [1, 1]} : vector<8x96xf32> to vector<8x32xf32>
    %34 = vector.extract_strided_slice %29 {offsets = [0, 64], sizes = [8, 32], strides = [1, 1]} : vector<8x96xf32> to vector<8x32xf32>
    %35 = arith.mulf %33, %16 : vector<8x32xf32>
    %36 = arith.mulf %32, %31 : vector<8x32xf32>
    %37 = arith.addf %35, %36 : vector<8x32xf32>
    %38 = math.tanh %37 : vector<8x32xf32>
    %39 = arith.mulf %34, %38 : vector<8x32xf32>
    %cst_29 = arith.constant dense<0.000000e+00> : vector<8x128xf32>
    %40 = tpu.matmul %39, %9, %cst_29 {dimension_numbers = #tpu.dot_dimension_numbers<[1], [0], [0], [1], [0, 0, 1, 1], [], []>} : vector<8x32xf32>, vector<32x128xf32>, vector<8x128xf32> -> vector<8x128xf32>
    %41 = arith.addf %40, %20 : vector<8x128xf32>
    %42 = arith.addf %41, %13 : vector<8x128xf32>
    %43 = vector.extract_strided_slice %42 {offsets = [0, 0], sizes = [8, 96], strides = [1, 1]} : vector<8x128xf32> to vector<8x96xf32>
    %44 = arith.negf %43 : vector<8x96xf32>
    %45 = math.exp %44 : vector<8x96xf32>
    %cst_30 = arith.constant 1.000000e+00 : f32
    %46 = vector.broadcast %cst_30 : f32 to vector<8x96xf32>
    %47 = arith.addf %46, %45 : vector<8x96xf32>
    %48 = arith.divf %46, %47 : vector<8x96xf32>
    %49 = vector.extract_strided_slice %42 {offsets = [0, 96], sizes = [8, 32], strides = [1, 1]} : vector<8x128xf32> to vector<8x32xf32>
    %50 = math.tanh %49 : vector<8x32xf32>
    %51 = vector.extract_strided_slice %48 {offsets = [0, 0], sizes = [8, 32], strides = [1, 1]} : vector<8x96xf32> to vector<8x32xf32>
    %52 = vector.extract_strided_slice %48 {offsets = [0, 32], sizes = [8, 32], strides = [1, 1]} : vector<8x96xf32> to vector<8x32xf32>
    %53 = vector.extract_strided_slice %48 {offsets = [0, 64], sizes = [8, 32], strides = [1, 1]} : vector<8x96xf32> to vector<8x32xf32>
    %54 = arith.mulf %52, %18 : vector<8x32xf32>
    %55 = arith.mulf %51, %50 : vector<8x32xf32>
    %56 = arith.addf %54, %55 : vector<8x32xf32>
    %57 = math.tanh %56 : vector<8x32xf32>
    %58 = arith.mulf %53, %57 : vector<8x32xf32>
    %59 = vector.extract_strided_slice %14 {offsets = [0, 0, 0], sizes = [1, 1, 32], strides = [1, 1, 1]} : vector<8x1x32xf32> to vector<1x1x32xf32>
    %60 = vector.shape_cast %59 : vector<1x1x32xf32> to vector<1x32xf32>
    %61 = vector.broadcast %60 : vector<1x32xf32> to vector<8x32xf32>
    %62 = arith.mulf %58, %61 : vector<8x32xf32>
    %63 = arith.addf %19, %62 : vector<8x32xf32>
    %cst_31 = arith.constant dense<0.000000e+00> : vector<8x128xf32>
    %64 = tpu.matmul %58, %10, %cst_31 {dimension_numbers = #tpu.dot_dimension_numbers<[1], [0], [0], [1], [0, 0, 1, 1], [], []>} : vector<8x32xf32>, vector<32x128xf32>, vector<8x128xf32> -> vector<8x128xf32>
    %c8 = arith.constant 8 : index
    %c0_32 = arith.constant 0 : index
    %65 = vector.load %arg11[%c8, %c0_32] : memref<64x128xf32, #tpu.memory_space<vmem>>, vector<8x128xf32>
    %cst_33 = arith.constant dense<0.000000e+00> : vector<8x128xf32>
    %66 = tpu.matmul %39, %8, %cst_33 {dimension_numbers = #tpu.dot_dimension_numbers<[1], [0], [0], [1], [0, 0, 1, 1], [], []>} : vector<8x32xf32>, vector<32x128xf32>, vector<8x128xf32> -> vector<8x128xf32>
    %67 = arith.addf %65, %66 : vector<8x128xf32>
    %68 = vector.extract_strided_slice %67 {offsets = [0, 0], sizes = [8, 96], strides = [1, 1]} : vector<8x128xf32> to vector<8x96xf32>
    %69 = arith.negf %68 : vector<8x96xf32>
    %70 = math.exp %69 : vector<8x96xf32>
    %cst_34 = arith.constant 1.000000e+00 : f32
    %71 = vector.broadcast %cst_34 : f32 to vector<8x96xf32>
    %72 = arith.addf %71, %70 : vector<8x96xf32>
    %73 = arith.divf %71, %72 : vector<8x96xf32>
    %74 = vector.extract_strided_slice %67 {offsets = [0, 96], sizes = [8, 32], strides = [1, 1]} : vector<8x128xf32> to vector<8x32xf32>
    %75 = math.tanh %74 : vector<8x32xf32>
    %76 = vector.extract_strided_slice %73 {offsets = [0, 0], sizes = [8, 32], strides = [1, 1]} : vector<8x96xf32> to vector<8x32xf32>
    %77 = vector.extract_strided_slice %73 {offsets = [0, 32], sizes = [8, 32], strides = [1, 1]} : vector<8x96xf32> to vector<8x32xf32>
    %78 = vector.extract_strided_slice %73 {offsets = [0, 64], sizes = [8, 32], strides = [1, 1]} : vector<8x96xf32> to vector<8x32xf32>
    %79 = arith.mulf %77, %37 : vector<8x32xf32>
    %80 = arith.mulf %76, %75 : vector<8x32xf32>
    %81 = arith.addf %79, %80 : vector<8x32xf32>
    %82 = math.tanh %81 : vector<8x32xf32>
    %83 = arith.mulf %78, %82 : vector<8x32xf32>
    %cst_35 = arith.constant dense<0.000000e+00> : vector<8x128xf32>
    %84 = tpu.matmul %83, %9, %cst_35 {dimension_numbers = #tpu.dot_dimension_numbers<[1], [0], [0], [1], [0, 0, 1, 1], [], []>} : vector<8x32xf32>, vector<32x128xf32>, vector<8x128xf32> -> vector<8x128xf32>
    %85 = arith.addf %84, %64 : vector<8x128xf32>
    %86 = arith.addf %85, %13 : vector<8x128xf32>
    %87 = vector.extract_strided_slice %86 {offsets = [0, 0], sizes = [8, 96], strides = [1, 1]} : vector<8x128xf32> to vector<8x96xf32>
    %88 = arith.negf %87 : vector<8x96xf32>
    %89 = math.exp %88 : vector<8x96xf32>
    %cst_36 = arith.constant 1.000000e+00 : f32
    %90 = vector.broadcast %cst_36 : f32 to vector<8x96xf32>
    %91 = arith.addf %90, %89 : vector<8x96xf32>
    %92 = arith.divf %90, %91 : vector<8x96xf32>
    %93 = vector.extract_strided_slice %86 {offsets = [0, 96], sizes = [8, 32], strides = [1, 1]} : vector<8x128xf32> to vector<8x32xf32>
    %94 = math.tanh %93 : vector<8x32xf32>
    %95 = vector.extract_strided_slice %92 {offsets = [0, 0], sizes = [8, 32], strides = [1, 1]} : vector<8x96xf32> to vector<8x32xf32>
    %96 = vector.extract_strided_slice %92 {offsets = [0, 32], sizes = [8, 32], strides = [1, 1]} : vector<8x96xf32> to vector<8x32xf32>
    %97 = vector.extract_strided_slice %92 {offsets = [0, 64], sizes = [8, 32], strides = [1, 1]} : vector<8x96xf32> to vector<8x32xf32>
    %98 = arith.mulf %96, %56 : vector<8x32xf32>
    %99 = arith.mulf %95, %94 : vector<8x32xf32>
    %100 = arith.addf %98, %99 : vector<8x32xf32>
    %101 = math.tanh %100 : vector<8x32xf32>
    %102 = arith.mulf %97, %101 : vector<8x32xf32>
    %103 = vector.extract_strided_slice %14 {offsets = [1, 0, 0], sizes = [1, 1, 32], strides = [1, 1, 1]} : vector<8x1x32xf32> to vector<1x1x32xf32>
    %104 = vector.shape_cast %103 : vector<1x1x32xf32> to vector<1x32xf32>
    %105 = vector.broadcast %104 : vector<1x32xf32> to vector<8x32xf32>
    %106 = arith.mulf %102, %105 : vector<8x32xf32>
    %107 = arith.addf %63, %106 : vector<8x32xf32>
    %cst_37 = arith.constant dense<0.000000e+00> : vector<8x128xf32>
    %108 = tpu.matmul %102, %10, %cst_37 {dimension_numbers = #tpu.dot_dimension_numbers<[1], [0], [0], [1], [0, 0, 1, 1], [], []>} : vector<8x32xf32>, vector<32x128xf32>, vector<8x128xf32> -> vector<8x128xf32>
    %c16 = arith.constant 16 : index
    %c0_38 = arith.constant 0 : index
    %109 = vector.load %arg11[%c16, %c0_38] : memref<64x128xf32, #tpu.memory_space<vmem>>, vector<8x128xf32>
    %cst_39 = arith.constant dense<0.000000e+00> : vector<8x128xf32>
    %110 = tpu.matmul %83, %8, %cst_39 {dimension_numbers = #tpu.dot_dimension_numbers<[1], [0], [0], [1], [0, 0, 1, 1], [], []>} : vector<8x32xf32>, vector<32x128xf32>, vector<8x128xf32> -> vector<8x128xf32>
    %111 = arith.addf %109, %110 : vector<8x128xf32>
    %112 = vector.extract_strided_slice %111 {offsets = [0, 0], sizes = [8, 96], strides = [1, 1]} : vector<8x128xf32> to vector<8x96xf32>
    %113 = arith.negf %112 : vector<8x96xf32>
    %114 = math.exp %113 : vector<8x96xf32>
    %cst_40 = arith.constant 1.000000e+00 : f32
    %115 = vector.broadcast %cst_40 : f32 to vector<8x96xf32>
    %116 = arith.addf %115, %114 : vector<8x96xf32>
    %117 = arith.divf %115, %116 : vector<8x96xf32>
    %118 = vector.extract_strided_slice %111 {offsets = [0, 96], sizes = [8, 32], strides = [1, 1]} : vector<8x128xf32> to vector<8x32xf32>
    %119 = math.tanh %118 : vector<8x32xf32>
    %120 = vector.extract_strided_slice %117 {offsets = [0, 0], sizes = [8, 32], strides = [1, 1]} : vector<8x96xf32> to vector<8x32xf32>
    %121 = vector.extract_strided_slice %117 {offsets = [0, 32], sizes = [8, 32], strides = [1, 1]} : vector<8x96xf32> to vector<8x32xf32>
    %122 = vector.extract_strided_slice %117 {offsets = [0, 64], sizes = [8, 32], strides = [1, 1]} : vector<8x96xf32> to vector<8x32xf32>
    %123 = arith.mulf %121, %81 : vector<8x32xf32>
    %124 = arith.mulf %120, %119 : vector<8x32xf32>
    %125 = arith.addf %123, %124 : vector<8x32xf32>
    %126 = math.tanh %125 : vector<8x32xf32>
    %127 = arith.mulf %122, %126 : vector<8x32xf32>
    %cst_41 = arith.constant dense<0.000000e+00> : vector<8x128xf32>
    %128 = tpu.matmul %127, %9, %cst_41 {dimension_numbers = #tpu.dot_dimension_numbers<[1], [0], [0], [1], [0, 0, 1, 1], [], []>} : vector<8x32xf32>, vector<32x128xf32>, vector<8x128xf32> -> vector<8x128xf32>
    %129 = arith.addf %128, %108 : vector<8x128xf32>
    %130 = arith.addf %129, %13 : vector<8x128xf32>
    %131 = vector.extract_strided_slice %130 {offsets = [0, 0], sizes = [8, 96], strides = [1, 1]} : vector<8x128xf32> to vector<8x96xf32>
    %132 = arith.negf %131 : vector<8x96xf32>
    %133 = math.exp %132 : vector<8x96xf32>
    %cst_42 = arith.constant 1.000000e+00 : f32
    %134 = vector.broadcast %cst_42 : f32 to vector<8x96xf32>
    %135 = arith.addf %134, %133 : vector<8x96xf32>
    %136 = arith.divf %134, %135 : vector<8x96xf32>
    %137 = vector.extract_strided_slice %130 {offsets = [0, 96], sizes = [8, 32], strides = [1, 1]} : vector<8x128xf32> to vector<8x32xf32>
    %138 = math.tanh %137 : vector<8x32xf32>
    %139 = vector.extract_strided_slice %136 {offsets = [0, 0], sizes = [8, 32], strides = [1, 1]} : vector<8x96xf32> to vector<8x32xf32>
    %140 = vector.extract_strided_slice %136 {offsets = [0, 32], sizes = [8, 32], strides = [1, 1]} : vector<8x96xf32> to vector<8x32xf32>
    %141 = vector.extract_strided_slice %136 {offsets = [0, 64], sizes = [8, 32], strides = [1, 1]} : vector<8x96xf32> to vector<8x32xf32>
    %142 = arith.mulf %140, %100 : vector<8x32xf32>
    %143 = arith.mulf %139, %138 : vector<8x32xf32>
    %144 = arith.addf %142, %143 : vector<8x32xf32>
    %145 = math.tanh %144 : vector<8x32xf32>
    %146 = arith.mulf %141, %145 : vector<8x32xf32>
    %147 = vector.extract_strided_slice %14 {offsets = [2, 0, 0], sizes = [1, 1, 32], strides = [1, 1, 1]} : vector<8x1x32xf32> to vector<1x1x32xf32>
    %148 = vector.shape_cast %147 : vector<1x1x32xf32> to vector<1x32xf32>
    %149 = vector.broadcast %148 : vector<1x32xf32> to vector<8x32xf32>
    %150 = arith.mulf %146, %149 : vector<8x32xf32>
    %151 = arith.addf %107, %150 : vector<8x32xf32>
    %cst_43 = arith.constant dense<0.000000e+00> : vector<8x128xf32>
    %152 = tpu.matmul %146, %10, %cst_43 {dimension_numbers = #tpu.dot_dimension_numbers<[1], [0], [0], [1], [0, 0, 1, 1], [], []>} : vector<8x32xf32>, vector<32x128xf32>, vector<8x128xf32> -> vector<8x128xf32>
    %c24 = arith.constant 24 : index
    %c0_44 = arith.constant 0 : index
    %153 = vector.load %arg11[%c24, %c0_44] : memref<64x128xf32, #tpu.memory_space<vmem>>, vector<8x128xf32>
    %cst_45 = arith.constant dense<0.000000e+00> : vector<8x128xf32>
    %154 = tpu.matmul %127, %8, %cst_45 {dimension_numbers = #tpu.dot_dimension_numbers<[1], [0], [0], [1], [0, 0, 1, 1], [], []>} : vector<8x32xf32>, vector<32x128xf32>, vector<8x128xf32> -> vector<8x128xf32>
    %155 = arith.addf %153, %154 : vector<8x128xf32>
    %156 = vector.extract_strided_slice %155 {offsets = [0, 0], sizes = [8, 96], strides = [1, 1]} : vector<8x128xf32> to vector<8x96xf32>
    %157 = arith.negf %156 : vector<8x96xf32>
    %158 = math.exp %157 : vector<8x96xf32>
    %cst_46 = arith.constant 1.000000e+00 : f32
    %159 = vector.broadcast %cst_46 : f32 to vector<8x96xf32>
    %160 = arith.addf %159, %158 : vector<8x96xf32>
    %161 = arith.divf %159, %160 : vector<8x96xf32>
    %162 = vector.extract_strided_slice %155 {offsets = [0, 96], sizes = [8, 32], strides = [1, 1]} : vector<8x128xf32> to vector<8x32xf32>
    %163 = math.tanh %162 : vector<8x32xf32>
    %164 = vector.extract_strided_slice %161 {offsets = [0, 0], sizes = [8, 32], strides = [1, 1]} : vector<8x96xf32> to vector<8x32xf32>
    %165 = vector.extract_strided_slice %161 {offsets = [0, 32], sizes = [8, 32], strides = [1, 1]} : vector<8x96xf32> to vector<8x32xf32>
    %166 = vector.extract_strided_slice %161 {offsets = [0, 64], sizes = [8, 32], strides = [1, 1]} : vector<8x96xf32> to vector<8x32xf32>
    %167 = arith.mulf %165, %125 : vector<8x32xf32>
    %168 = arith.mulf %164, %163 : vector<8x32xf32>
    %169 = arith.addf %167, %168 : vector<8x32xf32>
    %170 = math.tanh %169 : vector<8x32xf32>
    %171 = arith.mulf %166, %170 : vector<8x32xf32>
    %cst_47 = arith.constant dense<0.000000e+00> : vector<8x128xf32>
    %172 = tpu.matmul %171, %9, %cst_47 {dimension_numbers = #tpu.dot_dimension_numbers<[1], [0], [0], [1], [0, 0, 1, 1], [], []>} : vector<8x32xf32>, vector<32x128xf32>, vector<8x128xf32> -> vector<8x128xf32>
    %173 = arith.addf %172, %152 : vector<8x128xf32>
    %174 = arith.addf %173, %13 : vector<8x128xf32>
    %175 = vector.extract_strided_slice %174 {offsets = [0, 0], sizes = [8, 96], strides = [1, 1]} : vector<8x128xf32> to vector<8x96xf32>
    %176 = arith.negf %175 : vector<8x96xf32>
    %177 = math.exp %176 : vector<8x96xf32>
    %cst_48 = arith.constant 1.000000e+00 : f32
    %178 = vector.broadcast %cst_48 : f32 to vector<8x96xf32>
    %179 = arith.addf %178, %177 : vector<8x96xf32>
    %180 = arith.divf %178, %179 : vector<8x96xf32>
    %181 = vector.extract_strided_slice %174 {offsets = [0, 96], sizes = [8, 32], strides = [1, 1]} : vector<8x128xf32> to vector<8x32xf32>
    %182 = math.tanh %181 : vector<8x32xf32>
    %183 = vector.extract_strided_slice %180 {offsets = [0, 0], sizes = [8, 32], strides = [1, 1]} : vector<8x96xf32> to vector<8x32xf32>
    %184 = vector.extract_strided_slice %180 {offsets = [0, 32], sizes = [8, 32], strides = [1, 1]} : vector<8x96xf32> to vector<8x32xf32>
    %185 = vector.extract_strided_slice %180 {offsets = [0, 64], sizes = [8, 32], strides = [1, 1]} : vector<8x96xf32> to vector<8x32xf32>
    %186 = arith.mulf %184, %144 : vector<8x32xf32>
    %187 = arith.mulf %183, %182 : vector<8x32xf32>
    %188 = arith.addf %186, %187 : vector<8x32xf32>
    %189 = math.tanh %188 : vector<8x32xf32>
    %190 = arith.mulf %185, %189 : vector<8x32xf32>
    %191 = vector.extract_strided_slice %14 {offsets = [3, 0, 0], sizes = [1, 1, 32], strides = [1, 1, 1]} : vector<8x1x32xf32> to vector<1x1x32xf32>
    %192 = vector.shape_cast %191 : vector<1x1x32xf32> to vector<1x32xf32>
    %193 = vector.broadcast %192 : vector<1x32xf32> to vector<8x32xf32>
    %194 = arith.mulf %190, %193 : vector<8x32xf32>
    %195 = arith.addf %151, %194 : vector<8x32xf32>
    %cst_49 = arith.constant dense<0.000000e+00> : vector<8x128xf32>
    %196 = tpu.matmul %190, %10, %cst_49 {dimension_numbers = #tpu.dot_dimension_numbers<[1], [0], [0], [1], [0, 0, 1, 1], [], []>} : vector<8x32xf32>, vector<32x128xf32>, vector<8x128xf32> -> vector<8x128xf32>
    %c32 = arith.constant 32 : index
    %c0_50 = arith.constant 0 : index
    %197 = vector.load %arg11[%c32, %c0_50] : memref<64x128xf32, #tpu.memory_space<vmem>>, vector<8x128xf32>
    %cst_51 = arith.constant dense<0.000000e+00> : vector<8x128xf32>
    %198 = tpu.matmul %171, %8, %cst_51 {dimension_numbers = #tpu.dot_dimension_numbers<[1], [0], [0], [1], [0, 0, 1, 1], [], []>} : vector<8x32xf32>, vector<32x128xf32>, vector<8x128xf32> -> vector<8x128xf32>
    %199 = arith.addf %197, %198 : vector<8x128xf32>
    %200 = vector.extract_strided_slice %199 {offsets = [0, 0], sizes = [8, 96], strides = [1, 1]} : vector<8x128xf32> to vector<8x96xf32>
    %201 = arith.negf %200 : vector<8x96xf32>
    %202 = math.exp %201 : vector<8x96xf32>
    %cst_52 = arith.constant 1.000000e+00 : f32
    %203 = vector.broadcast %cst_52 : f32 to vector<8x96xf32>
    %204 = arith.addf %203, %202 : vector<8x96xf32>
    %205 = arith.divf %203, %204 : vector<8x96xf32>
    %206 = vector.extract_strided_slice %199 {offsets = [0, 96], sizes = [8, 32], strides = [1, 1]} : vector<8x128xf32> to vector<8x32xf32>
    %207 = math.tanh %206 : vector<8x32xf32>
    %208 = vector.extract_strided_slice %205 {offsets = [0, 0], sizes = [8, 32], strides = [1, 1]} : vector<8x96xf32> to vector<8x32xf32>
    %209 = vector.extract_strided_slice %205 {offsets = [0, 32], sizes = [8, 32], strides = [1, 1]} : vector<8x96xf32> to vector<8x32xf32>
    %210 = vector.extract_strided_slice %205 {offsets = [0, 64], sizes = [8, 32], strides = [1, 1]} : vector<8x96xf32> to vector<8x32xf32>
    %211 = arith.mulf %209, %169 : vector<8x32xf32>
    %212 = arith.mulf %208, %207 : vector<8x32xf32>
    %213 = arith.addf %211, %212 : vector<8x32xf32>
    %214 = math.tanh %213 : vector<8x32xf32>
    %215 = arith.mulf %210, %214 : vector<8x32xf32>
    %cst_53 = arith.constant dense<0.000000e+00> : vector<8x128xf32>
    %216 = tpu.matmul %215, %9, %cst_53 {dimension_numbers = #tpu.dot_dimension_numbers<[1], [0], [0], [1], [0, 0, 1, 1], [], []>} : vector<8x32xf32>, vector<32x128xf32>, vector<8x128xf32> -> vector<8x128xf32>
    %217 = arith.addf %216, %196 : vector<8x128xf32>
    %218 = arith.addf %217, %13 : vector<8x128xf32>
    %219 = vector.extract_strided_slice %218 {offsets = [0, 0], sizes = [8, 96], strides = [1, 1]} : vector<8x128xf32> to vector<8x96xf32>
    %220 = arith.negf %219 : vector<8x96xf32>
    %221 = math.exp %220 : vector<8x96xf32>
    %cst_54 = arith.constant 1.000000e+00 : f32
    %222 = vector.broadcast %cst_54 : f32 to vector<8x96xf32>
    %223 = arith.addf %222, %221 : vector<8x96xf32>
    %224 = arith.divf %222, %223 : vector<8x96xf32>
    %225 = vector.extract_strided_slice %218 {offsets = [0, 96], sizes = [8, 32], strides = [1, 1]} : vector<8x128xf32> to vector<8x32xf32>
    %226 = math.tanh %225 : vector<8x32xf32>
    %227 = vector.extract_strided_slice %224 {offsets = [0, 0], sizes = [8, 32], strides = [1, 1]} : vector<8x96xf32> to vector<8x32xf32>
    %228 = vector.extract_strided_slice %224 {offsets = [0, 32], sizes = [8, 32], strides = [1, 1]} : vector<8x96xf32> to vector<8x32xf32>
    %229 = vector.extract_strided_slice %224 {offsets = [0, 64], sizes = [8, 32], strides = [1, 1]} : vector<8x96xf32> to vector<8x32xf32>
    %230 = arith.mulf %228, %188 : vector<8x32xf32>
    %231 = arith.mulf %227, %226 : vector<8x32xf32>
    %232 = arith.addf %230, %231 : vector<8x32xf32>
    %233 = math.tanh %232 : vector<8x32xf32>
    %234 = arith.mulf %229, %233 : vector<8x32xf32>
    %235 = vector.extract_strided_slice %14 {offsets = [4, 0, 0], sizes = [1, 1, 32], strides = [1, 1, 1]} : vector<8x1x32xf32> to vector<1x1x32xf32>
    %236 = vector.shape_cast %235 : vector<1x1x32xf32> to vector<1x32xf32>
    %237 = vector.broadcast %236 : vector<1x32xf32> to vector<8x32xf32>
    %238 = arith.mulf %234, %237 : vector<8x32xf32>
    %239 = arith.addf %195, %238 : vector<8x32xf32>
    %cst_55 = arith.constant dense<0.000000e+00> : vector<8x128xf32>
    %240 = tpu.matmul %234, %10, %cst_55 {dimension_numbers = #tpu.dot_dimension_numbers<[1], [0], [0], [1], [0, 0, 1, 1], [], []>} : vector<8x32xf32>, vector<32x128xf32>, vector<8x128xf32> -> vector<8x128xf32>
    %c40 = arith.constant 40 : index
    %c0_56 = arith.constant 0 : index
    %241 = vector.load %arg11[%c40, %c0_56] : memref<64x128xf32, #tpu.memory_space<vmem>>, vector<8x128xf32>
    %cst_57 = arith.constant dense<0.000000e+00> : vector<8x128xf32>
    %242 = tpu.matmul %215, %8, %cst_57 {dimension_numbers = #tpu.dot_dimension_numbers<[1], [0], [0], [1], [0, 0, 1, 1], [], []>} : vector<8x32xf32>, vector<32x128xf32>, vector<8x128xf32> -> vector<8x128xf32>
    %243 = arith.addf %241, %242 : vector<8x128xf32>
    %244 = vector.extract_strided_slice %243 {offsets = [0, 0], sizes = [8, 96], strides = [1, 1]} : vector<8x128xf32> to vector<8x96xf32>
    %245 = arith.negf %244 : vector<8x96xf32>
    %246 = math.exp %245 : vector<8x96xf32>
    %cst_58 = arith.constant 1.000000e+00 : f32
    %247 = vector.broadcast %cst_58 : f32 to vector<8x96xf32>
    %248 = arith.addf %247, %246 : vector<8x96xf32>
    %249 = arith.divf %247, %248 : vector<8x96xf32>
    %250 = vector.extract_strided_slice %243 {offsets = [0, 96], sizes = [8, 32], strides = [1, 1]} : vector<8x128xf32> to vector<8x32xf32>
    %251 = math.tanh %250 : vector<8x32xf32>
    %252 = vector.extract_strided_slice %249 {offsets = [0, 0], sizes = [8, 32], strides = [1, 1]} : vector<8x96xf32> to vector<8x32xf32>
    %253 = vector.extract_strided_slice %249 {offsets = [0, 32], sizes = [8, 32], strides = [1, 1]} : vector<8x96xf32> to vector<8x32xf32>
    %254 = vector.extract_strided_slice %249 {offsets = [0, 64], sizes = [8, 32], strides = [1, 1]} : vector<8x96xf32> to vector<8x32xf32>
    %255 = arith.mulf %253, %213 : vector<8x32xf32>
    %256 = arith.mulf %252, %251 : vector<8x32xf32>
    %257 = arith.addf %255, %256 : vector<8x32xf32>
    %258 = math.tanh %257 : vector<8x32xf32>
    %259 = arith.mulf %254, %258 : vector<8x32xf32>
    %cst_59 = arith.constant dense<0.000000e+00> : vector<8x128xf32>
    %260 = tpu.matmul %259, %9, %cst_59 {dimension_numbers = #tpu.dot_dimension_numbers<[1], [0], [0], [1], [0, 0, 1, 1], [], []>} : vector<8x32xf32>, vector<32x128xf32>, vector<8x128xf32> -> vector<8x128xf32>
    %261 = arith.addf %260, %240 : vector<8x128xf32>
    %262 = arith.addf %261, %13 : vector<8x128xf32>
    %263 = vector.extract_strided_slice %262 {offsets = [0, 0], sizes = [8, 96], strides = [1, 1]} : vector<8x128xf32> to vector<8x96xf32>
    %264 = arith.negf %263 : vector<8x96xf32>
    %265 = math.exp %264 : vector<8x96xf32>
    %cst_60 = arith.constant 1.000000e+00 : f32
    %266 = vector.broadcast %cst_60 : f32 to vector<8x96xf32>
    %267 = arith.addf %266, %265 : vector<8x96xf32>
    %268 = arith.divf %266, %267 : vector<8x96xf32>
    %269 = vector.extract_strided_slice %262 {offsets = [0, 96], sizes = [8, 32], strides = [1, 1]} : vector<8x128xf32> to vector<8x32xf32>
    %270 = math.tanh %269 : vector<8x32xf32>
    %271 = vector.extract_strided_slice %268 {offsets = [0, 0], sizes = [8, 32], strides = [1, 1]} : vector<8x96xf32> to vector<8x32xf32>
    %272 = vector.extract_strided_slice %268 {offsets = [0, 32], sizes = [8, 32], strides = [1, 1]} : vector<8x96xf32> to vector<8x32xf32>
    %273 = vector.extract_strided_slice %268 {offsets = [0, 64], sizes = [8, 32], strides = [1, 1]} : vector<8x96xf32> to vector<8x32xf32>
    %274 = arith.mulf %272, %232 : vector<8x32xf32>
    %275 = arith.mulf %271, %270 : vector<8x32xf32>
    %276 = arith.addf %274, %275 : vector<8x32xf32>
    %277 = math.tanh %276 : vector<8x32xf32>
    %278 = arith.mulf %273, %277 : vector<8x32xf32>
    %279 = vector.extract_strided_slice %14 {offsets = [5, 0, 0], sizes = [1, 1, 32], strides = [1, 1, 1]} : vector<8x1x32xf32> to vector<1x1x32xf32>
    %280 = vector.shape_cast %279 : vector<1x1x32xf32> to vector<1x32xf32>
    %281 = vector.broadcast %280 : vector<1x32xf32> to vector<8x32xf32>
    %282 = arith.mulf %278, %281 : vector<8x32xf32>
    %283 = arith.addf %239, %282 : vector<8x32xf32>
    %cst_61 = arith.constant dense<0.000000e+00> : vector<8x128xf32>
    %284 = tpu.matmul %278, %10, %cst_61 {dimension_numbers = #tpu.dot_dimension_numbers<[1], [0], [0], [1], [0, 0, 1, 1], [], []>} : vector<8x32xf32>, vector<32x128xf32>, vector<8x128xf32> -> vector<8x128xf32>
    %c48 = arith.constant 48 : index
    %c0_62 = arith.constant 0 : index
    %285 = vector.load %arg11[%c48, %c0_62] : memref<64x128xf32, #tpu.memory_space<vmem>>, vector<8x128xf32>
    %cst_63 = arith.constant dense<0.000000e+00> : vector<8x128xf32>
    %286 = tpu.matmul %259, %8, %cst_63 {dimension_numbers = #tpu.dot_dimension_numbers<[1], [0], [0], [1], [0, 0, 1, 1], [], []>} : vector<8x32xf32>, vector<32x128xf32>, vector<8x128xf32> -> vector<8x128xf32>
    %287 = arith.addf %285, %286 : vector<8x128xf32>
    %288 = vector.extract_strided_slice %287 {offsets = [0, 0], sizes = [8, 96], strides = [1, 1]} : vector<8x128xf32> to vector<8x96xf32>
    %289 = arith.negf %288 : vector<8x96xf32>
    %290 = math.exp %289 : vector<8x96xf32>
    %cst_64 = arith.constant 1.000000e+00 : f32
    %291 = vector.broadcast %cst_64 : f32 to vector<8x96xf32>
    %292 = arith.addf %291, %290 : vector<8x96xf32>
    %293 = arith.divf %291, %292 : vector<8x96xf32>
    %294 = vector.extract_strided_slice %287 {offsets = [0, 96], sizes = [8, 32], strides = [1, 1]} : vector<8x128xf32> to vector<8x32xf32>
    %295 = math.tanh %294 : vector<8x32xf32>
    %296 = vector.extract_strided_slice %293 {offsets = [0, 0], sizes = [8, 32], strides = [1, 1]} : vector<8x96xf32> to vector<8x32xf32>
    %297 = vector.extract_strided_slice %293 {offsets = [0, 32], sizes = [8, 32], strides = [1, 1]} : vector<8x96xf32> to vector<8x32xf32>
    %298 = vector.extract_strided_slice %293 {offsets = [0, 64], sizes = [8, 32], strides = [1, 1]} : vector<8x96xf32> to vector<8x32xf32>
    %299 = arith.mulf %297, %257 : vector<8x32xf32>
    %300 = arith.mulf %296, %295 : vector<8x32xf32>
    %301 = arith.addf %299, %300 : vector<8x32xf32>
    %302 = math.tanh %301 : vector<8x32xf32>
    %303 = arith.mulf %298, %302 : vector<8x32xf32>
    %cst_65 = arith.constant dense<0.000000e+00> : vector<8x128xf32>
    %304 = tpu.matmul %303, %9, %cst_65 {dimension_numbers = #tpu.dot_dimension_numbers<[1], [0], [0], [1], [0, 0, 1, 1], [], []>} : vector<8x32xf32>, vector<32x128xf32>, vector<8x128xf32> -> vector<8x128xf32>
    %305 = arith.addf %304, %284 : vector<8x128xf32>
    %306 = arith.addf %305, %13 : vector<8x128xf32>
    %307 = vector.extract_strided_slice %306 {offsets = [0, 0], sizes = [8, 96], strides = [1, 1]} : vector<8x128xf32> to vector<8x96xf32>
    %308 = arith.negf %307 : vector<8x96xf32>
    %309 = math.exp %308 : vector<8x96xf32>
    %cst_66 = arith.constant 1.000000e+00 : f32
    %310 = vector.broadcast %cst_66 : f32 to vector<8x96xf32>
    %311 = arith.addf %310, %309 : vector<8x96xf32>
    %312 = arith.divf %310, %311 : vector<8x96xf32>
    %313 = vector.extract_strided_slice %306 {offsets = [0, 96], sizes = [8, 32], strides = [1, 1]} : vector<8x128xf32> to vector<8x32xf32>
    %314 = math.tanh %313 : vector<8x32xf32>
    %315 = vector.extract_strided_slice %312 {offsets = [0, 0], sizes = [8, 32], strides = [1, 1]} : vector<8x96xf32> to vector<8x32xf32>
    %316 = vector.extract_strided_slice %312 {offsets = [0, 32], sizes = [8, 32], strides = [1, 1]} : vector<8x96xf32> to vector<8x32xf32>
    %317 = vector.extract_strided_slice %312 {offsets = [0, 64], sizes = [8, 32], strides = [1, 1]} : vector<8x96xf32> to vector<8x32xf32>
    %318 = arith.mulf %316, %276 : vector<8x32xf32>
    %319 = arith.mulf %315, %314 : vector<8x32xf32>
    %320 = arith.addf %318, %319 : vector<8x32xf32>
    %321 = math.tanh %320 : vector<8x32xf32>
    %322 = arith.mulf %317, %321 : vector<8x32xf32>
    %323 = vector.extract_strided_slice %14 {offsets = [6, 0, 0], sizes = [1, 1, 32], strides = [1, 1, 1]} : vector<8x1x32xf32> to vector<1x1x32xf32>
    %324 = vector.shape_cast %323 : vector<1x1x32xf32> to vector<1x32xf32>
    %325 = vector.broadcast %324 : vector<1x32xf32> to vector<8x32xf32>
    %326 = arith.mulf %322, %325 : vector<8x32xf32>
    %327 = arith.addf %283, %326 : vector<8x32xf32>
    %cst_67 = arith.constant dense<0.000000e+00> : vector<8x128xf32>
    %328 = tpu.matmul %322, %10, %cst_67 {dimension_numbers = #tpu.dot_dimension_numbers<[1], [0], [0], [1], [0, 0, 1, 1], [], []>} : vector<8x32xf32>, vector<32x128xf32>, vector<8x128xf32> -> vector<8x128xf32>
    %c56 = arith.constant 56 : index
    %c0_68 = arith.constant 0 : index
    %329 = vector.load %arg11[%c56, %c0_68] : memref<64x128xf32, #tpu.memory_space<vmem>>, vector<8x128xf32>
    %cst_69 = arith.constant dense<0.000000e+00> : vector<8x128xf32>
    %330 = tpu.matmul %303, %8, %cst_69 {dimension_numbers = #tpu.dot_dimension_numbers<[1], [0], [0], [1], [0, 0, 1, 1], [], []>} : vector<8x32xf32>, vector<32x128xf32>, vector<8x128xf32> -> vector<8x128xf32>
    %331 = arith.addf %329, %330 : vector<8x128xf32>
    %332 = vector.extract_strided_slice %331 {offsets = [0, 0], sizes = [8, 96], strides = [1, 1]} : vector<8x128xf32> to vector<8x96xf32>
    %333 = arith.negf %332 : vector<8x96xf32>
    %334 = math.exp %333 : vector<8x96xf32>
    %cst_70 = arith.constant 1.000000e+00 : f32
    %335 = vector.broadcast %cst_70 : f32 to vector<8x96xf32>
    %336 = arith.addf %335, %334 : vector<8x96xf32>
    %337 = arith.divf %335, %336 : vector<8x96xf32>
    %338 = vector.extract_strided_slice %331 {offsets = [0, 96], sizes = [8, 32], strides = [1, 1]} : vector<8x128xf32> to vector<8x32xf32>
    %339 = math.tanh %338 : vector<8x32xf32>
    %340 = vector.extract_strided_slice %337 {offsets = [0, 0], sizes = [8, 32], strides = [1, 1]} : vector<8x96xf32> to vector<8x32xf32>
    %341 = vector.extract_strided_slice %337 {offsets = [0, 32], sizes = [8, 32], strides = [1, 1]} : vector<8x96xf32> to vector<8x32xf32>
    %342 = vector.extract_strided_slice %337 {offsets = [0, 64], sizes = [8, 32], strides = [1, 1]} : vector<8x96xf32> to vector<8x32xf32>
    %343 = arith.mulf %341, %301 : vector<8x32xf32>
    %344 = arith.mulf %340, %339 : vector<8x32xf32>
    %345 = arith.addf %343, %344 : vector<8x32xf32>
    %346 = math.tanh %345 : vector<8x32xf32>
    %347 = arith.mulf %342, %346 : vector<8x32xf32>
    %cst_71 = arith.constant dense<0.000000e+00> : vector<8x128xf32>
    %348 = tpu.matmul %347, %9, %cst_71 {dimension_numbers = #tpu.dot_dimension_numbers<[1], [0], [0], [1], [0, 0, 1, 1], [], []>} : vector<8x32xf32>, vector<32x128xf32>, vector<8x128xf32> -> vector<8x128xf32>
    %349 = arith.addf %348, %328 : vector<8x128xf32>
    %350 = arith.addf %349, %13 : vector<8x128xf32>
    %351 = vector.extract_strided_slice %350 {offsets = [0, 0], sizes = [8, 96], strides = [1, 1]} : vector<8x128xf32> to vector<8x96xf32>
    %352 = arith.negf %351 : vector<8x96xf32>
    %353 = math.exp %352 : vector<8x96xf32>
    %cst_72 = arith.constant 1.000000e+00 : f32
    %354 = vector.broadcast %cst_72 : f32 to vector<8x96xf32>
    %355 = arith.addf %354, %353 : vector<8x96xf32>
    %356 = arith.divf %354, %355 : vector<8x96xf32>
    %357 = vector.extract_strided_slice %350 {offsets = [0, 96], sizes = [8, 32], strides = [1, 1]} : vector<8x128xf32> to vector<8x32xf32>
    %358 = math.tanh %357 : vector<8x32xf32>
    %359 = vector.extract_strided_slice %356 {offsets = [0, 0], sizes = [8, 32], strides = [1, 1]} : vector<8x96xf32> to vector<8x32xf32>
    %360 = vector.extract_strided_slice %356 {offsets = [0, 32], sizes = [8, 32], strides = [1, 1]} : vector<8x96xf32> to vector<8x32xf32>
    %361 = vector.extract_strided_slice %356 {offsets = [0, 64], sizes = [8, 32], strides = [1, 1]} : vector<8x96xf32> to vector<8x32xf32>
    %362 = arith.mulf %360, %320 : vector<8x32xf32>
    %363 = arith.mulf %359, %358 : vector<8x32xf32>
    %364 = arith.addf %362, %363 : vector<8x32xf32>
    %365 = math.tanh %364 : vector<8x32xf32>
    %366 = arith.mulf %361, %365 : vector<8x32xf32>
    %367 = vector.extract_strided_slice %14 {offsets = [7, 0, 0], sizes = [1, 1, 32], strides = [1, 1, 1]} : vector<8x1x32xf32> to vector<1x1x32xf32>
    %368 = vector.shape_cast %367 : vector<1x1x32xf32> to vector<1x32xf32>
    %369 = vector.broadcast %368 : vector<1x32xf32> to vector<8x32xf32>
    %370 = arith.mulf %366, %369 : vector<8x32xf32>
    %371 = arith.addf %327, %370 : vector<8x32xf32>
    %cst_73 = arith.constant dense<0.000000e+00> : vector<8xf32>
    %372 = vector.multi_reduction <add>, %371, %cst_73 [1] : vector<8x32xf32> to vector<8xf32>
    %373 = vector.shape_cast %372 : vector<8xf32> to vector<8x1xf32>
    %c0_74 = arith.constant 0 : index
    %c0_75 = arith.constant 0 : index
    %374 = memref.load %arg9[%c0_74, %c0_75] : memref<1x1xf32, #tpu.memory_space<smem>>
    %375 = vector.broadcast %374 : f32 to vector<8x1xf32>
    %376 = arith.addf %373, %375 : vector<8x1xf32>
    %c0_76 = arith.constant 0 : index
    %c0_77 = arith.constant 0 : index
    %377 = vector.load %arg10[%c0_76, %c0_77] : memref<8x1xf32, #tpu.memory_space<vmem>>, vector<8x1xf32>
    tpu.vector_store %arg10[%c0_76, %c0_77], %376 {strides = array<i32>} : memref<8x1xf32, #tpu.memory_space<vmem>>, vector<8x1xf32>,
    return
  }
  func.func @transform_0(%arg0: i32) -> (i32, i32, i32) {
    %c0_i32 = arith.constant 0 : i32
    %c0_i32_0 = arith.constant 0 : i32
    %c0_i32_1 = arith.constant 0 : i32
    return %arg0, %c0_i32, %c0_i32_0 : i32, i32, i32
  }
  func.func @transform_1(%arg0: i32) -> (i32, i32) {
    %c0_i32 = arith.constant 0 : i32
    %c0_i32_0 = arith.constant 0 : i32
    %c0_i32_1 = arith.constant 0 : i32
    return %c0_i32, %c0_i32_0 : i32, i32
  }
  func.func @transform_2(%arg0: i32) -> (i32, i32) {
    %c0_i32 = arith.constant 0 : i32
    %c0_i32_0 = arith.constant 0 : i32
    %c0_i32_1 = arith.constant 0 : i32
    return %c0_i32, %c0_i32_0 : i32, i32
  }
  func.func @transform_3(%arg0: i32) -> (i32, i32) {
    %c0_i32 = arith.constant 0 : i32
    %c0_i32_0 = arith.constant 0 : i32
    %c0_i32_1 = arith.constant 0 : i32
    return %c0_i32, %c0_i32_0 : i32, i32
  }
  func.func @transform_4(%arg0: i32) -> (i32, i32) {
    %c0_i32 = arith.constant 0 : i32
    %c0_i32_0 = arith.constant 0 : i32
    %c0_i32_1 = arith.constant 0 : i32
    return %c0_i32, %c0_i32_0 : i32, i32
  }
  func.func @transform_5(%arg0: i32) -> (i32, i32) {
    %c0_i32 = arith.constant 0 : i32
    %c0_i32_0 = arith.constant 0 : i32
    %c0_i32_1 = arith.constant 0 : i32
    return %c0_i32, %c0_i32_0 : i32, i32
  }
  func.func @transform_6(%arg0: i32) -> (i32, i32) {
    %c0_i32 = arith.constant 0 : i32
    %c0_i32_0 = arith.constant 0 : i32
    %c0_i32_1 = arith.constant 0 : i32
    return %c0_i32, %c0_i32_0 : i32, i32
  }
  func.func @transform_7(%arg0: i32) -> (i32, i32, i32) {
    %c0_i32 = arith.constant 0 : i32
    %c0_i32_0 = arith.constant 0 : i32
    %c0_i32_1 = arith.constant 0 : i32
    %c0_i32_2 = arith.constant 0 : i32
    return %c0_i32, %c0_i32_0, %c0_i32_1 : i32, i32, i32
  }
  func.func @transform_8(%arg0: i32) -> (i32, i32) {
    %c0_i32 = arith.constant 0 : i32
    %c0_i32_0 = arith.constant 0 : i32
    %c0_i32_1 = arith.constant 0 : i32
    return %c0_i32, %c0_i32_0 : i32, i32
  }
  func.func @transform_9(%arg0: i32) -> (i32, i32) {
    %c0_i32 = arith.constant 0 : i32
    %c0_i32_0 = arith.constant 0 : i32
    return %arg0, %c0_i32 : i32, i32
  }
}

</mosaic_0001>

<bundles_post_ra>
// kernel: mv_lstm_forward.1
= control target key start
LH: loop header
LB: loop body
LE: loop exit
PB: predicated region body
PF: predicated region fallthrough
CT: control target
= control target key end

     0   :  { %vm74_vm0 = vcmask 1043456   ;;  %v3091_v0 = vmov 0.0   ;;  %vm3092_vm1 = vmmov 0   ;;  %vm49_vm2 = vcmask 31744   ;;  %s3093_s11 = smov 32   ;;  %s3094_s10 = smov 64   ;;  %s3789_s5 = inlined_call_operand.vmem [shape: f32[32,128], index: 5, kind: input, shape index: {}]   ;;  %s3790_s1 = inlined_call_operand.vmem [shape: f32[4,128], index: 1, kind: input, shape index: {}]   ;;  %s3791_s0 = inlined_call_operand.vmem [shape: f32[1,64,4], index: 0, kind: input, shape index: {}]   ;;  %s3792_s2 = inlined_call_operand.vmem [shape: f32[32,128], index: 2, kind: input, shape index: {}]   ;;  %s3793_s3 = inlined_call_operand.vmem [shape: f32[1,128], index: 3, kind: input, shape index: {}]   ;;  %s3794_s4 = inlined_call_operand.vmem [shape: f32[32,128], index: 4, kind: input, shape index: {}]   ;;  %s3795_s6 = inlined_call_operand.vmem [shape: f32[1,128], index: 6, kind: input, shape index: {}]   ;;  %s3796_s7 = inlined_call_operand.vmem [shape: f32[8,1,32], index: 7, kind: input, shape index: {}]   ;;  %s3797_s8 = inlined_call_operand.<no memory space> [shape: f32[1,1], index: 8, kind: input, shape index: {}]   ;;  %s3798_s9 = inlined_call_operand.vmem [shape: f32[8,1], index: 9, kind: output, shape index: {}]  }
   0x1   :  { %2681 = vmatprep.subr.mxu1 %v3091_v0  ;;  %v3149_v1 = vld [vmem:[%s3789_s5 + $0x18] sm:$0xff]  ;;  %v3154_v2 = vld [vmem:[%s3789_s5 + $0x10] sm:$0xff]  ;;  %2689 = vmatprep.mubr.msk.f32.mxu1 %vm3092_vm1, %v3091_v0  ;;  %v41_v3 = vld [vmem:[%s3790_s1] sm:$0xf]  ;;  %vm218_vm3 = vcmask 261120   ;;  %vm2475_vm4 = vcmask 7168  }
   0x2   :  { %2682 = vmatpush3.msra.mxu1 %v3149_v1  ;;  %v33_v4 = vld [vmem:[%s3791_s0] sm:$0xff]  ;;  %v3169_v5 = vld [vmem:[%s3789_s5 + $0x8] sm:$0xff]  ;;  %2667 = vmatprep.subr.msk.mxu0 %vm74_vm0, %v41_v3  ;;  %v3190_v8 = vld [vmem:[%s3792_s2 + $0x18] sm:$0xff] }
   0x3   :  { %2683 = vmatprep.subr.mxu1 %v3091_v0  ;;  %v34_v6 = vld [vmem:[%s3791_s0 + $0x8] sm:$0xff]  ;;  %2668 = vmatpush3.msk.msra.mxu0 %vm74_vm0, %v41_v3  ;;  %v3181_v7 = vld [vmem:[%s3789_s5] sm:$0xff]  ;;  %v3199_v9 = vld [vmem:[%s3792_s2 + $0x10] sm:$0xff] }
   0x4   :  { %2684 = vmatpush3.msra.mxu1 %v3154_v2  ;;  %2669 = vmatprep.mubr.msk.f32.mxu0 %vm49_vm2, %v33_v4  ;;  %v3208_v10 = vld [vmem:[%s3792_s2 + $0x8] sm:$0xff]  ;;  %v3215_v11 = vld [vmem:[%s3792_s2] sm:$0xff]  ;;  %v35_v31 = vld [vmem:[%s3791_s0 + $0x10] sm:$0xff] }
   0x5   :  { %2685 = vmatprep.subr.mxu1 %v3091_v0  ;;  %2670 = vmatmul.mubr.msk.f32.vlgmr.msra.gmra.mxu0 %vm49_vm2, %v34_v6  ;;  %v3239_v15 = vld [vmem:[%s3793_s3] ss:$0 sm:$0xff]  ;;  %v36_v32 = vld [vmem:[%s3791_s0 + $0x18] sm:$0xff]  ;;  %v3262_v34 = vld [vmem:[%s3794_s4 + $0x10] sm:$0xff] }
   0x6   :  { %2686 = vmatpush3.msra.mxu1 %v3169_v5  ;;  %2703 = vmatprep.subr.mxu0 %v3091_v0  ;;  %v3256_v33 = vld [vmem:[%s3794_s4 + $0x18] sm:$0xff]  ;;  %v37_v35 = vld [vmem:[%s3791_s0 + $0x20] sm:$0xff]  ;;  %v3273_v36 = vld [vmem:[%s3794_s4 + $0x8] sm:$0xff] }
   0x7   :  { %2687 = vmatprep.subr.mxu1 %v3091_v0  ;;  %2672 = vmatprep.mubr.msk.f32.mxu0 %vm49_vm2, %v35_v31  ;;  %v38_v37 = vld [vmem:[%s3791_s0 + $0x28] sm:$0xff]  ;;  %v39_v38 = vld [vmem:[%s3791_s0 + $0x30] sm:$0xff]  ;;  %v3287_v39 = vld [vmem:[%s3794_s4] sm:$0xff] }
   0x8   :  { %2688 = vmatpush3.msra.mxu1 %v3181_v7  ;;  %2704 = vmatpush3.msra.mxu0 %v3256_v33  ;;  %v40_v40 = vld [vmem:[%s3791_s0 + $0x38] sm:$0xff]  ;;  %v3340_v51 = vld [vmem:[%s3795_s6] ss:$0 sm:$0xff] }
   0x9   :  { %2690 = vmatmul.mubr.f32.vlgmr.msra.gmra.mxu1 %v3091_v0  ;;  %2692 = vmatprep.subr.mxu1 %v3091_v0 }
   0xa   :  { %2693 = vmatpush3.msra.mxu1 %v3190_v8  ;;  %2700 = vmatprep.mubr.msk.f32.mxu1 %vm3092_vm1, %v3091_v0 }
   0xb   :  { %2694 = vmatprep.subr.mxu1 %v3091_v0  ;;  %2673 = vmatmul.mubr.msk.f32.gmra.mxu0 %vm49_vm2, %v36_v32 }
   0xc   :  { %2695 = vmatpush3.msra.mxu1 %v3199_v9  ;;  %2705 = vmatprep.subr.mxu0 %v3091_v0 }
   0xd   :  { %2696 = vmatprep.subr.mxu1 %v3091_v0  ;;  %2706 = vmatpush3.msra.mxu0 %v3262_v34 }
   0xe   :  { %2697 = vmatpush3.msra.mxu1 %v3208_v10  ;;  %2675 = vmatprep.mubr.msk.f32.mxu0 %vm49_vm2, %v37_v35 }
   0xf   :  { %2698 = vmatprep.subr.mxu1 %v3091_v0  ;;  %2707 = vmatprep.subr.mxu0 %v3091_v0 }
  0x10   :  { %2699 = vmatpush3.msra.mxu1 %v3215_v11  ;;  %2708 = vmatpush3.msra.mxu0 %v3273_v36 }
  0x11   :  { %2701 = vmatmul.mubr.f32.vlgmr.msra.gmra.mxu1 %v3091_v0  ;;  %2714 = vmatprep.subr.mxu1 %v3091_v0 }
  0x12   :  { %2715 = vmatpush3.msra.mxu1 %v3149_v1  ;;  %2722 = vmatprep.mubr.msk.f32.mxu1 %vm3092_vm1, %v3091_v0 }
  0x13   :  { %2716 = vmatprep.subr.mxu1 %v3091_v0  ;;  %2676 = vmatmul.mubr.msk.f32.gmra.mxu0 %vm49_vm2, %v38_v37 }
  0x14   :  { %2717 = vmatpush3.msra.mxu1 %v3154_v2  ;;  %2709 = vmatprep.subr.mxu0 %v3091_v0 }
  0x15   :  { %2718 = vmatprep.subr.mxu1 %v3091_v0  ;;  %2678 = vmatprep.mubr.msk.f32.mxu0 %vm49_vm2, %v39_v38 }
  0x16   :  { %2719 = vmatpush3.msra.mxu1 %v3169_v5  ;;  %2710 = vmatpush3.msra.mxu0 %v3287_v39 }
  0x17   :  { %2720 = vmatprep.subr.mxu1 %v3091_v0  ;;  %2725 = vmatprep.subr.mxu0 %v3091_v0 }
  0x18   :  { %2721 = vmatpush3.msra.mxu1 %v3181_v7  ;;  %2679 = vmatmul.mubr.msk.f32.gmra.mxu0 %vm49_vm2, %v40_v40 }
  0x19   :  { %2736 = vmatprep.subr.mxu1 %v3091_v0  ;;  %2711 = vmatprep.mubr.msk.f32.mxu0 %vm3092_vm1, %v3091_v0 }
  0xc5   :  { %v3234_v13 = vpop.f32.mrf.mxu0 }
  0xc6   :  { %v150_v56 = vadd.f32 %v3234_v13, %v3239_v15 }
  0xc7   :  { %v144_v16 = vpop.f32.mrf.mxu0 }
  0xc8   :  { %v145_v17 = vadd.f32 %v3239_v15, %v144_v16 }
  0xc9   :  { %v3232_v12 = vpop.f32.mrf.mxu1 }
  0xcb   :  { %v2691_v14 = vpop.f32.mrf.mxu1  ;;  %v3325_v45 = vpop.f32.mrf.mxu0 }
  0xcd   :  { %v3327_v46 = vpop.f32.mrf.mxu0 }
  0xd1   :  { %v359_v18 = vpop.f32.mrf.mxu1 }
  0xd2   :  { %v363_v19 = vadd.f32 %v359_v18, %v145_v17 }
  0xd3   :  { %v2702_v20 = vpop.f32.mrf.mxu1  ;;  %v3329_v47 = vpop.f32.mrf.mxu0 }
  0xd4   :  { %2949 = vtanh.f32 %v363_v19  ;;  %v2492_v22 = vmul.f32 -1.442695, %v363_v19 }
  0xd5   :  { %v3331_v48 = vpop.f32.mrf.mxu0 }
  0xd6   :  { %2951 = vpow2.f32 %v2492_v22 }
  0xd8   :  { %v3333_v49 = vpop.f32.mrf.mxu0 }
  0xda   :  { %v3335_v50 = vpop.f32.mrf.mxu0 }
  0xe1   :  { %v2950_v21 = vpop.eup %2949 }
  0xe2   :  { %373 = vrot.lane.b32.xlu0 %v2950_v21, %s3093_s11 }
  0xe3   :  { %v2952_v23 = vpop.eup %2951 }
  0xe4   :  { %v367_v24 = vadd.f32 1.0, %v2952_v23 }
  0xe6   :  { %2953 = vrcp.f32 %v367_v24 }
  0xf3   :  { %v2954_v25 = vpop.eup %2953 }
  0xf4   :  { %v371_v28 = vmul.f32 0.0, %v2954_v25 }
 0x154   :  { %v374_v26 = vpop.permute.xlu0 %373 }
 0x155   :  { %v376_v27 = vmul.f32 %v2954_v25, %v374_v26 }
 0x157   :  { %378 = vrot.lane.b32.xlu0 %v376_v27, %s3093_s11 }
 0x1c9   :  { %v379_v29 = vpop.permute.xlu0 %378 }
 0x1ca   :  { %v3244_v30 = vadd.f32 %v379_v29, %v371_v28 }
 0x1cc   :  { %2955 = vtanh.f32 %v3244_v30 }
 0x1d9   :  { %v2956_v41 = vpop.eup %2955 }
 0x1da   :  { %384 = vrot.lane.b32.xlu1 %v2956_v41, %s3093_s11 }
 0x24c   :  { %v385_v42 = vpop.permute.xlu1 %384 }
 0x24d   :  { %v387_v43 = vmul.f32 %v2954_v25, %v385_v42 }
 0x24f   :  { %389 = vrot.lane.b32.xlu1 %v387_v43, %s3094_s10 }
 0x2c1   :  { %v390_v44 = vpop.permute.xlu1 %389 }
 0x2c2   :  { %2712 = vmatmul.mubr.msk.f32.vlgmr.msra.gmra.mxu0 %vm218_vm3, %v390_v44 }
 0x2c3   :  { %2726 = vmatpush3.msra.mxu0 %v3190_v8  ;;  %2733 = vmatprep.mubr.msk.f32.mxu0 %vm3092_vm1, %v3091_v0 }
 0x2c4   :  { %2727 = vmatprep.subr.mxu0 %v3091_v0 }
 0x2c5   :  { %2728 = vmatpush3.msra.mxu0 %v3199_v9 }
 0x2c6   :  { %2729 = vmatprep.subr.mxu0 %v3091_v0 }
 0x2c7   :  { %2730 = vmatpush3.msra.mxu0 %v3208_v10 }
 0x2c8   :  { %2731 = vmatprep.subr.mxu0 %v3091_v0 }
 0x2c9   :  { %2732 = vmatpush3.msra.mxu0 %v3215_v11 }
 0x2ca   :  { %2734 = vmatmul.mubr.msk.f32.vlgmr.msra.gmra.mxu0 %vm218_vm3, %v390_v44  ;;  %2747 = vmatprep.subr.mxu0 %v3091_v0  ;;  %v155_v44 = vadd.f32 %v3239_v15, %v3327_v46 }
 0x2cb   :  { %2748 = vmatpush3.msra.mxu0 %v3149_v1  ;;  %2755 = vmatprep.mubr.msk.f32.mxu0 %vm3092_vm1, %v3091_v0 }
 0x2cc   :  { %2749 = vmatprep.subr.mxu0 %v3091_v0 }
 0x2cd   :  { %2750 = vmatpush3.msra.mxu0 %v3154_v2 }
 0x2ce   :  { %2751 = vmatprep.subr.mxu0 %v3091_v0 }
 0x2cf   :  { %2752 = vmatpush3.msra.mxu0 %v3169_v5 }
 0x2d0   :  { %2753 = vmatprep.subr.mxu0 %v3091_v0 }
 0x2d1   :  { %2754 = vmatpush3.msra.mxu0 %v3181_v7 }
 0x2d2   :  { %2769 = vmatprep.subr.mxu0 %v3091_v0 }
 0x382   :  { %v459_v52 = vpop.f32.mrf.mxu0 }
 0x383   :  { %v460_v53 = vadd.f32 %v459_v52, %v3232_v12 }
 0x384   :  { %v2713_v54 = vpop.f32.mrf.mxu0 }
 0x385   :  { %v463_v55 = vadd.f32 %v3340_v51, %v460_v53 }
 0x387   :  { %2957 = vtanh.f32 %v463_v55  ;;  %v2494_v62 = vmul.f32 -1.442695, %v463_v55 }
 0x38a   :  { %v640_v57 = vpop.f32.mrf.mxu0 }
 0x38b   :  { %v644_v58 = vadd.f32 %v640_v57, %v150_v56 }
 0x38c   :  { %v2735_v59 = vpop.f32.mrf.mxu0 }
 0x38d   :  { %2959 = vtanh.f32 %v644_v58  ;;  %v2498_v63 = vmul.f32 -1.442695, %v644_v58 }
 0x38e   :  { %2961 = vpow2.f32 %v2494_v62 }
 0x38f   :  { %2963 = vpow2.f32 %v2498_v63 }
 0x394   :  { %v2958_v60 = vpop.eup %2957 }
 0x395   :  { %473 = vrot.lane.b32.xlu0 %v2958_v60, %s3093_s11 }
 0x39a   :  { %v2960_v61 = vpop.eup %2959 }
 0x39b   :  { %654 = vrot.lane.b32.xlu1 %v2960_v61, %s3093_s11  ;;  %v2962_v3 = vpop.eup %2961 }
 0x39c   :  { %v467_v4 = vadd.f32 1.0, %v2962_v3  ;;  %v2964_v6 = vpop.eup %2963 }
 0x39d   :  { %v648_v12 = vadd.f32 1.0, %v2964_v6 }
 0x39e   :  { %2965 = vrcp.f32 %v467_v4 }
 0x39f   :  { %2967 = vrcp.f32 %v648_v12 }
 0x3ab   :  { %v2966_v13 = vpop.eup %2965 }
 0x3ac   :  { %v2968_v17 = vpop.eup %2967  ;;  %v471_v20 = vmul.f32 0.0, %v2966_v13 }
 0x3ad   :  { %v652_v23 = vmul.f32 %v2968_v17, %v3244_v30 }
 0x407   :  { %v474_v14 = vpop.permute.xlu0 %473 }
 0x408   :  { %v476_v16 = vmul.f32 %v2966_v13, %v474_v14 }
 0x40a   :  { %478 = vrot.lane.b32.xlu0 %v476_v16, %s3093_s11 }
 0x40d   :  { %v655_v18 = vpop.permute.xlu1 %654 }
 0x40e   :  { %v657_v19 = vmul.f32 %v2968_v17, %v655_v18 }
 0x410   :  { %659 = vrot.lane.b32.xlu1 %v657_v19, %s3093_s11 }
 0x47c   :  { %v479_v21 = vpop.permute.xlu0 %478 }
 0x47d   :  { %v3350_v22 = vadd.f32 %v479_v21, %v471_v20 }
 0x47f   :  { %2969 = vtanh.f32 %v3350_v22 }
 0x482   :  { %v660_v24 = vpop.permute.xlu1 %659 }
 0x483   :  { %v3354_v25 = vadd.f32 %v660_v24, %v652_v23 }
 0x485   :  { %2971 = vtanh.f32 %v3354_v25 }
 0x48c   :  { %v2970_v26 = vpop.eup %2969 }
 0x48d   :  { %484 = vrot.lane.b32.xlu0 %v2970_v26, %s3093_s11 }
 0x492   :  { %v2972_v27 = vpop.eup %2971 }
 0x493   :  { %665 = vrot.lane.b32.xlu1 %v2972_v27, %s3093_s11 }
 0x4ff   :  { %v485_v28 = vpop.permute.xlu0 %484 }
 0x500   :  { %v3359_v29 = vmul.f32 %v2966_v13, %v485_v28 }
 0x502   :  { %499 = vrot.lane.b32.xlu0 %v3359_v29, %s3094_s10 }
 0x505   :  { %v666_v31 = vpop.permute.xlu1 %665 }
 0x506   :  { %v668_v32 = vmul.f32 %v2968_v17, %v666_v31 }
 0x508   :  { %670 = vrot.lane.b32.xlu1 %v668_v32, %s3094_s10 }
 0x574   :  { %v500_v30 = vpop.permute.xlu0 %499 }
 0x575   :  { %2723 = vmatmul.mubr.msk.f32.vlgmr.msra.gmra.mxu1 %vm218_vm3, %v500_v30 }
 0x576   :  { %2737 = vmatpush3.msra.mxu1 %v3256_v33  ;;  %2744 = vmatprep.mubr.msk.f32.mxu1 %vm3092_vm1, %v3091_v0 }
 0x577   :  { %2738 = vmatprep.subr.mxu1 %v3091_v0 }
 0x578   :  { %2739 = vmatpush3.msra.mxu1 %v3262_v34 }
 0x579   :  { %2740 = vmatprep.subr.mxu1 %v3091_v0 }
 0x57a   :  { %2741 = vmatpush3.msra.mxu1 %v3273_v36  ;;  %v671_v35 = vpop.permute.xlu1 %670 }
 0x57b   :  { %2742 = vmatprep.subr.mxu1 %v3091_v0 }
 0x57c   :  { %2743 = vmatpush3.msra.mxu1 %v3287_v39 }
 0x57d   :  { %2745 = vmatmul.mubr.msk.f32.vlgmr.msra.gmra.mxu1 %vm218_vm3, %v671_v35  ;;  %2758 = vmatprep.subr.mxu1 %v3091_v0 }
 0x57e   :  { %2759 = vmatpush3.msra.mxu1 %v3190_v8  ;;  %2766 = vmatprep.mubr.msk.f32.mxu1 %vm3092_vm1, %v3091_v0 }
 0x57f   :  { %2760 = vmatprep.subr.mxu1 %v3091_v0 }
 0x580   :  { %2761 = vmatpush3.msra.mxu1 %v3199_v9 }
 0x581   :  { %2762 = vmatprep.subr.mxu1 %v3091_v0 }
 0x582   :  { %2763 = vmatpush3.msra.mxu1 %v3208_v10 }
 0x583   :  { %2764 = vmatprep.subr.mxu1 %v3091_v0 }
 0x584   :  { %2765 = vmatpush3.msra.mxu1 %v3215_v11 }
 0x585   :  { %2767 = vmatmul.mubr.msk.f32.vlgmr.msra.gmra.mxu1 %vm218_vm3, %v671_v35  ;;  %2780 = vmatprep.subr.mxu1 %v3091_v0 }
 0x586   :  { %2781 = vmatpush3.msra.mxu1 %v3149_v1  ;;  %2788 = vmatprep.mubr.msk.f32.mxu1 %vm3092_vm1, %v3091_v0 }
 0x587   :  { %2782 = vmatprep.subr.mxu1 %v3091_v0 }
 0x588   :  { %2783 = vmatpush3.msra.mxu1 %v3154_v2 }
 0x589   :  { %2784 = vmatprep.subr.mxu1 %v3091_v0 }
 0x58a   :  { %2785 = vmatpush3.msra.mxu1 %v3169_v5 }
 0x58b   :  { %2786 = vmatprep.subr.mxu1 %v3091_v0 }
 0x58c   :  { %2787 = vmatpush3.msra.mxu1 %v3181_v7 }
 0x58d   :  { %2802 = vmatprep.subr.mxu1 %v3091_v0 }
 0x635   :  { %v569_v37 = vpop.f32.mrf.mxu1 }
 0x637   :  { %v2724_v38 = vpop.f32.mrf.mxu1 }
 0x638   :  { %v160_v38 = vadd.f32 %v3325_v45, %v3239_v15 }
 0x63d   :  { %v740_v40 = vpop.f32.mrf.mxu1 }
 0x63e   :  { %v741_v41 = vadd.f32 %v740_v40, %v569_v37 }
 0x63f   :  { %v2746_v42 = vpop.f32.mrf.mxu1 }
 0x640   :  { %v744_v43 = vadd.f32 %v3340_v51, %v741_v41 }
 0x642   :  { %2973 = vtanh.f32 %v744_v43  ;;  %v2500_v57 = vmul.f32 -1.442695, %v744_v43 }
 0x645   :  { %v921_v52 = vpop.f32.mrf.mxu1 }
 0x646   :  { %v925_v53 = vadd.f32 %v921_v52, %v155_v44 }
 0x647   :  { %v2768_v54 = vpop.f32.mrf.mxu1 }
 0x648   :  { %2975 = vtanh.f32 %v925_v53  ;;  %v2504_v58 = vmul.f32 -1.442695, %v925_v53 }
 0x649   :  { %2977 = vpow2.f32 %v2500_v57 }
 0x64a   :  { %2979 = vpow2.f32 %v2504_v58 }
 0x64f   :  { %v2974_v55 = vpop.eup %2973 }
 0x650   :  { %754 = vrot.lane.b32.xlu0 %v2974_v55, %s3093_s11 }
 0x655   :  { %v2976_v56 = vpop.eup %2975 }
 0x656   :  { %935 = vrot.lane.b32.xlu1 %v2976_v56, %s3093_s11  ;;  %v2978_v59 = vpop.eup %2977 }
 0x657   :  { %v748_v60 = vadd.f32 1.0, %v2978_v59  ;;  %v2980_v61 = vpop.eup %2979 }
 0x658   :  { %v929_v62 = vadd.f32 1.0, %v2980_v61 }
 0x659   :  { %2981 = vrcp.f32 %v748_v60 }
 0x65a   :  { %2983 = vrcp.f32 %v929_v62 }
 0x666   :  { %v2982_v46 = vpop.eup %2981 }
 0x667   :  { %v2984_v4 = vpop.eup %2983  ;;  %v752_v13 = vmul.f32 %v2982_v46, %v3350_v22 }
 0x668   :  { %v933_v17 = vmul.f32 %v2984_v4, %v3354_v25 }
 0x6c2   :  { %v755_v63 = vpop.permute.xlu0 %754 }
 0x6c3   :  { %v757_v3 = vmul.f32 %v2982_v46, %v755_v63 }
 0x6c5   :  { %759 = vrot.lane.b32.xlu0 %v757_v3, %s3093_s11 }
 0x6c8   :  { %v936_v6 = vpop.permute.xlu1 %935 }
 0x6c9   :  { %v938_v12 = vmul.f32 %v2984_v4, %v936_v6 }
 0x6cb   :  { %940 = vrot.lane.b32.xlu1 %v938_v12, %s3093_s11 }
 0x737   :  { %v760_v14 = vpop.permute.xlu0 %759 }
 0x738   :  { %v3405_v16 = vadd.f32 %v760_v14, %v752_v13 }
 0x73a   :  { %2985 = vtanh.f32 %v3405_v16 }
 0x73d   :  { %v941_v18 = vpop.permute.xlu1 %940 }
 0x73e   :  { %v3409_v19 = vadd.f32 %v941_v18, %v933_v17 }
 0x740   :  { %2987 = vtanh.f32 %v3409_v19 }
 0x747   :  { %v2986_v20 = vpop.eup %2985 }
 0x748   :  { %765 = vrot.lane.b32.xlu0 %v2986_v20, %s3093_s11 }
 0x74d   :  { %v2988_v21 = vpop.eup %2987 }
 0x74e   :  { %946 = vrot.lane.b32.xlu1 %v2988_v21, %s3093_s11 }
 0x7ba   :  { %v766_v23 = vpop.permute.xlu0 %765 }
 0x7bb   :  { %v3414_v22 = vmul.f32 %v2982_v46, %v766_v23 }
 0x7bd   :  { %780 = vrot.lane.b32.xlu0 %v3414_v22, %s3094_s10 }
 0x7c0   :  { %v947_v24 = vpop.permute.xlu1 %946 }
 0x7c1   :  { %v949_v26 = vmul.f32 %v2984_v4, %v947_v24 }
 0x7c3   :  { %951 = vrot.lane.b32.xlu1 %v949_v26, %s3094_s10 }
 0x82f   :  { %v781_v25 = vpop.permute.xlu0 %780 }
 0x830   :  { %2756 = vmatmul.mubr.msk.f32.vlgmr.msra.gmra.mxu0 %vm218_vm3, %v781_v25 }
 0x831   :  { %2770 = vmatpush3.msra.mxu0 %v3256_v33  ;;  %2777 = vmatprep.mubr.msk.f32.mxu0 %vm3092_vm1, %v3091_v0 }
 0x832   :  { %2771 = vmatprep.subr.mxu0 %v3091_v0 }
 0x833   :  { %2772 = vmatpush3.msra.mxu0 %v3262_v34 }
 0x834   :  { %2773 = vmatprep.subr.mxu0 %v3091_v0 }
 0x835   :  { %2774 = vmatpush3.msra.mxu0 %v3273_v36  ;;  %v952_v27 = vpop.permute.xlu1 %951 }
 0x836   :  { %2775 = vmatprep.subr.mxu0 %v3091_v0 }
 0x837   :  { %2776 = vmatpush3.msra.mxu0 %v3287_v39 }
 0x838   :  { %2778 = vmatmul.mubr.msk.f32.vlgmr.msra.gmra.mxu0 %vm218_vm3, %v952_v27  ;;  %2791 = vmatprep.subr.mxu0 %v3091_v0 }
 0x839   :  { %2792 = vmatpush3.msra.mxu0 %v3190_v8  ;;  %2799 = vmatprep.mubr.msk.f32.mxu0 %vm3092_vm1, %v3091_v0 }
 0x83a   :  { %2793 = vmatprep.subr.mxu0 %v3091_v0 }
 0x83b   :  { %2794 = vmatpush3.msra.mxu0 %v3199_v9 }
 0x83c   :  { %2795 = vmatprep.subr.mxu0 %v3091_v0 }
 0x83d   :  { %2796 = vmatpush3.msra.mxu0 %v3208_v10 }
 0x83e   :  { %2797 = vmatprep.subr.mxu0 %v3091_v0 }
 0x83f   :  { %2798 = vmatpush3.msra.mxu0 %v3215_v11 }
 0x840   :  { %2800 = vmatmul.mubr.msk.f32.vlgmr.msra.gmra.mxu0 %vm218_vm3, %v952_v27  ;;  %2813 = vmatprep.subr.mxu0 %v3091_v0 }
 0x841   :  { %2814 = vmatpush3.msra.mxu0 %v3149_v1  ;;  %2821 = vmatprep.mubr.msk.f32.mxu0 %vm3092_vm1, %v3091_v0 }
 0x842   :  { %2815 = vmatprep.subr.mxu0 %v3091_v0 }
 0x843   :  { %2816 = vmatpush3.msra.mxu0 %v3154_v2 }
 0x844   :  { %2817 = vmatprep.subr.mxu0 %v3091_v0 }
 0x845   :  { %2818 = vmatpush3.msra.mxu0 %v3169_v5 }
 0x846   :  { %2819 = vmatprep.subr.mxu0 %v3091_v0 }
 0x847   :  { %2820 = vmatpush3.msra.mxu0 %v3181_v7 }
 0x848   :  { %2835 = vmatprep.subr.mxu0 %v3091_v0 }
 0x8f0   :  { %v850_v28 = vpop.f32.mrf.mxu0 }
 0x8f2   :  { %v2757_v31 = vpop.f32.mrf.mxu0 }
 0x8f3   :  { %v165_v31 = vadd.f32 %v3239_v15, %v3331_v48 }
 0x8f8   :  { %v1021_v32 = vpop.f32.mrf.mxu0 }
 0x8f9   :  { %v1022_v30 = vadd.f32 %v1021_v32, %v850_v28 }
 0x8fa   :  { %v2779_v35 = vpop.f32.mrf.mxu0 }
 0x8fb   :  { %v1025_v37 = vadd.f32 %v3340_v51, %v1022_v30 }
 0x8fd   :  { %2989 = vtanh.f32 %v1025_v37  ;;  %v2506_v52 = vmul.f32 -1.442695, %v1025_v37 }
 0x900   :  { %v1202_v40 = vpop.f32.mrf.mxu0 }
 0x901   :  { %v1206_v41 = vadd.f32 %v1202_v40, %v160_v38 }
 0x902   :  { %v2801_v42 = vpop.f32.mrf.mxu0 }
 0x903   :  { %2991 = vtanh.f32 %v1206_v41  ;;  %v2510_v53 = vmul.f32 -1.442695, %v1206_v41 }
 0x904   :  { %2993 = vpow2.f32 %v2506_v52 }
 0x905   :  { %2995 = vpow2.f32 %v2510_v53 }
 0x90a   :  { %v2990_v43 = vpop.eup %2989 }
 0x90b   :  { %1035 = vrot.lane.b32.xlu0 %v2990_v43, %s3093_s11 }
 0x910   :  { %v2992_v44 = vpop.eup %2991 }
 0x911   :  { %1216 = vrot.lane.b32.xlu1 %v2992_v44, %s3093_s11  ;;  %v2994_v54 = vpop.eup %2993 }
 0x912   :  { %v1029_v55 = vadd.f32 1.0, %v2994_v54  ;;  %v2996_v56 = vpop.eup %2995 }
 0x913   :  { %v1210_v57 = vadd.f32 1.0, %v2996_v56 }
 0x914   :  { %2997 = vrcp.f32 %v1029_v55 }
 0x915   :  { %2999 = vrcp.f32 %v1210_v57 }
 0x921   :  { %v2998_v45 = vpop.eup %2997 }
 0x922   :  { %v3000_v60 = vpop.eup %2999  ;;  %v1033_v46 = vmul.f32 %v2998_v45, %v3405_v16 }
 0x923   :  { %v1214_v4 = vmul.f32 %v3000_v60, %v3409_v19 }
 0x97d   :  { %v1036_v58 = vpop.permute.xlu0 %1035 }
 0x97e   :  { %v1038_v59 = vmul.f32 %v2998_v45, %v1036_v58 }
 0x980   :  { %1040 = vrot.lane.b32.xlu0 %v1038_v59, %s3093_s11 }
 0x983   :  { %v1217_v61 = vpop.permute.xlu1 %1216 }
 0x984   :  { %v1219_v62 = vmul.f32 %v3000_v60, %v1217_v61 }
 0x986   :  { %1221 = vrot.lane.b32.xlu1 %v1219_v62, %s3093_s11 }
 0x9f2   :  { %v1041_v63 = vpop.permute.xlu0 %1040 }
 0x9f3   :  { %v3460_v3 = vadd.f32 %v1041_v63, %v1033_v46 }
 0x9f5   :  { %3001 = vtanh.f32 %v3460_v3 }
 0x9f8   :  { %v1222_v6 = vpop.permute.xlu1 %1221 }
 0x9f9   :  { %v3464_v12 = vadd.f32 %v1222_v6, %v1214_v4 }
 0x9fb   :  { %3003 = vtanh.f32 %v3464_v12 }
 0xa02   :  { %v3002_v13 = vpop.eup %3001 }
 0xa03   :  { %1046 = vrot.lane.b32.xlu0 %v3002_v13, %s3093_s11 }
 0xa08   :  { %v3004_v14 = vpop.eup %3003 }
 0xa09   :  { %1227 = vrot.lane.b32.xlu1 %v3004_v14, %s3093_s11 }
 0xa75   :  { %v1047_v17 = vpop.permute.xlu0 %1046 }
 0xa76   :  { %v3469_v16 = vmul.f32 %v2998_v45, %v1047_v17 }
 0xa78   :  { %1061 = vrot.lane.b32.xlu0 %v3469_v16, %s3094_s10 }
 0xa7b   :  { %v1228_v18 = vpop.permute.xlu1 %1227 }
 0xa7c   :  { %v1230_v20 = vmul.f32 %v3000_v60, %v1228_v18 }
 0xa7e   :  { %1232 = vrot.lane.b32.xlu1 %v1230_v20, %s3094_s10 }
 0xaea   :  { %v1062_v19 = vpop.permute.xlu0 %1061 }
 0xaeb   :  { %2789 = vmatmul.mubr.msk.f32.vlgmr.msra.gmra.mxu1 %vm218_vm3, %v1062_v19 }
 0xaec   :  { %2803 = vmatpush3.msra.mxu1 %v3256_v33  ;;  %2810 = vmatprep.mubr.msk.f32.mxu1 %vm3092_vm1, %v3091_v0 }
 0xaed   :  { %2804 = vmatprep.subr.mxu1 %v3091_v0 }
 0xaee   :  { %2805 = vmatpush3.msra.mxu1 %v3262_v34 }
 0xaef   :  { %2806 = vmatprep.subr.mxu1 %v3091_v0 }
 0xaf0   :  { %2807 = vmatpush3.msra.mxu1 %v3273_v36  ;;  %v1233_v21 = vpop.permute.xlu1 %1232 }
 0xaf1   :  { %2808 = vmatprep.subr.mxu1 %v3091_v0 }
 0xaf2   :  { %2809 = vmatpush3.msra.mxu1 %v3287_v39 }
 0xaf3   :  { %2811 = vmatmul.mubr.msk.f32.vlgmr.msra.gmra.mxu1 %vm218_vm3, %v1233_v21  ;;  %2824 = vmatprep.subr.mxu1 %v3091_v0 }
 0xaf4   :  { %2825 = vmatpush3.msra.mxu1 %v3190_v8  ;;  %2832 = vmatprep.mubr.msk.f32.mxu1 %vm3092_vm1, %v3091_v0 }
 0xaf5   :  { %2826 = vmatprep.subr.mxu1 %v3091_v0 }
 0xaf6   :  { %2827 = vmatpush3.msra.mxu1 %v3199_v9 }
 0xaf7   :  { %2828 = vmatprep.subr.mxu1 %v3091_v0 }
 0xaf8   :  { %2829 = vmatpush3.msra.mxu1 %v3208_v10 }
 0xaf9   :  { %2830 = vmatprep.subr.mxu1 %v3091_v0 }
 0xafa   :  { %2831 = vmatpush3.msra.mxu1 %v3215_v11 }
 0xafb   :  { %2833 = vmatmul.mubr.msk.f32.vlgmr.msra.gmra.mxu1 %vm218_vm3, %v1233_v21  ;;  %2846 = vmatprep.subr.mxu1 %v3091_v0 }
 0xafc   :  { %2847 = vmatpush3.msra.mxu1 %v3149_v1  ;;  %2854 = vmatprep.mubr.msk.f32.mxu1 %vm3092_vm1, %v3091_v0 }
 0xafd   :  { %2848 = vmatprep.subr.mxu1 %v3091_v0 }
 0xafe   :  { %2849 = vmatpush3.msra.mxu1 %v3154_v2 }
 0xaff   :  { %2850 = vmatprep.subr.mxu1 %v3091_v0 }
 0xb00   :  { %2851 = vmatpush3.msra.mxu1 %v3169_v5 }
 0xb01   :  { %2852 = vmatprep.subr.mxu1 %v3091_v0 }
 0xb02   :  { %2853 = vmatpush3.msra.mxu1 %v3181_v7 }
 0xb03   :  { %2868 = vmatprep.subr.mxu1 %v3091_v0 }
 0xbab   :  { %v1131_v23 = vpop.f32.mrf.mxu1 }
 0xbad   :  { %v2790_v24 = vpop.f32.mrf.mxu1 }
 0xbb3   :  { %v1302_v26 = vpop.f32.mrf.mxu1 }
 0xbb4   :  { %v1303_v25 = vadd.f32 %v1302_v26, %v1131_v23 }
 0xbb5   :  { %v2812_v27 = vpop.f32.mrf.mxu1 }
 0xbb6   :  { %v1306_v28 = vadd.f32 %v3340_v51, %v1303_v25 }
 0xbb8   :  { %3005 = vtanh.f32 %v1306_v28  ;;  %v2512_v40 = vmul.f32 -1.442695, %v1306_v28 }
 0xbbb   :  { %v1483_v32 = vpop.f32.mrf.mxu1 }
 0xbbc   :  { %v1487_v30 = vadd.f32 %v1483_v32, %v165_v31 }
 0xbbd   :  { %v2834_v35 = vpop.f32.mrf.mxu1 }
 0xbbe   :  { %3007 = vtanh.f32 %v1487_v30  ;;  %v2516_v41 = vmul.f32 -1.442695, %v1487_v30 }
 0xbbf   :  { %3009 = vpow2.f32 %v2512_v40 }
 0xbc0   :  { %3011 = vpow2.f32 %v2516_v41 }
 0xbc5   :  { %v3006_v37 = vpop.eup %3005 }
 0xbc6   :  { %1316 = vrot.lane.b32.xlu0 %v3006_v37, %s3093_s11 }
 0xbcb   :  { %v3008_v38 = vpop.eup %3007 }
 0xbcc   :  { %1497 = vrot.lane.b32.xlu1 %v3008_v38, %s3093_s11  ;;  %v3010_v42 = vpop.eup %3009 }
 0xbcd   :  { %v1310_v43 = vadd.f32 1.0, %v3010_v42  ;;  %v3012_v44 = vpop.eup %3011 }
 0xbce   :  { %v1491_v52 = vadd.f32 1.0, %v3012_v44 }
 0xbcf   :  { %3013 = vrcp.f32 %v1310_v43 }
 0xbd0   :  { %3015 = vrcp.f32 %v1491_v52 }
 0xbdc   :  { %v3014_v48 = vpop.eup %3013 }
 0xbdd   :  { %v3016_v55 = vpop.eup %3015  ;;  %v1314_v45 = vmul.f32 %v3014_v48, %v3460_v3 }
 0xbde   :  { %v1495_v60 = vmul.f32 %v3016_v55, %v3464_v12 }
 0xc38   :  { %v1317_v53 = vpop.permute.xlu0 %1316 }
 0xc39   :  { %v1319_v54 = vmul.f32 %v3014_v48, %v1317_v53 }
 0xc3b   :  { %1321 = vrot.lane.b32.xlu0 %v1319_v54, %s3093_s11 }
 0xc3e   :  { %v1498_v56 = vpop.permute.xlu1 %1497 }
 0xc3f   :  { %v1500_v57 = vmul.f32 %v3016_v55, %v1498_v56 }
 0xc41   :  { %1502 = vrot.lane.b32.xlu1 %v1500_v57, %s3093_s11 }
 0xcad   :  { %v1322_v58 = vpop.permute.xlu0 %1321 }
 0xcae   :  { %v3515_v59 = vadd.f32 %v1322_v58, %v1314_v45 }
 0xcb0   :  { %3017 = vtanh.f32 %v3515_v59 }
 0xcb3   :  { %v1503_v61 = vpop.permute.xlu1 %1502 }
 0xcb4   :  { %v3519_v62 = vadd.f32 %v1503_v61, %v1495_v60 }
 0xcb6   :  { %3019 = vtanh.f32 %v3519_v62 }
 0xcbd   :  { %v3018_v46 = vpop.eup %3017 }
 0xcbe   :  { %1327 = vrot.lane.b32.xlu0 %v3018_v46, %s3093_s11 }
 0xcc3   :  { %v3020_v63 = vpop.eup %3019 }
 0xcc4   :  { %1508 = vrot.lane.b32.xlu1 %v3020_v63, %s3093_s11 }
 0xd30   :  { %v1328_v4 = vpop.permute.xlu0 %1327 }
 0xd31   :  { %v3524_v3 = vmul.f32 %v3014_v48, %v1328_v4  ;;  %v175_v4 = vadd.f32 %v3239_v15, %v3335_v50 }
 0xd33   :  { %1342 = vrot.lane.b32.xlu0 %v3524_v3, %s3094_s10 }
 0xd36   :  { %v1509_v6 = vpop.permute.xlu1 %1508 }
 0xd37   :  { %v1511_v13 = vmul.f32 %v3016_v55, %v1509_v6 }
 0xd39   :  { %1513 = vrot.lane.b32.xlu1 %v1511_v13, %s3094_s10 }
 0xda5   :  { %v1343_v12 = vpop.permute.xlu0 %1342 }
 0xda6   :  { %2822 = vmatmul.mubr.msk.f32.vlgmr.msra.gmra.mxu0 %vm218_vm3, %v1343_v12 }
 0xda7   :  { %2836 = vmatpush3.msra.mxu0 %v3256_v33  ;;  %2843 = vmatprep.mubr.msk.f32.mxu0 %vm3092_vm1, %v3091_v0 }
 0xda8   :  { %2837 = vmatprep.subr.mxu0 %v3091_v0 }
 0xda9   :  { %2838 = vmatpush3.msra.mxu0 %v3262_v34 }
 0xdaa   :  { %2839 = vmatprep.subr.mxu0 %v3091_v0 }
 0xdab   :  { %2840 = vmatpush3.msra.mxu0 %v3273_v36  ;;  %v1514_v14 = vpop.permute.xlu1 %1513 }
 0xdac   :  { %2841 = vmatprep.subr.mxu0 %v3091_v0 }
 0xdad   :  { %2842 = vmatpush3.msra.mxu0 %v3287_v39 }
 0xdae   :  { %2844 = vmatmul.mubr.msk.f32.vlgmr.msra.gmra.mxu0 %vm218_vm3, %v1514_v14  ;;  %2857 = vmatprep.subr.mxu0 %v3091_v0 }
 0xdaf   :  { %2858 = vmatpush3.msra.mxu0 %v3190_v8  ;;  %2865 = vmatprep.mubr.msk.f32.mxu0 %vm3092_vm1, %v3091_v0 }
 0xdb0   :  { %2859 = vmatprep.subr.mxu0 %v3091_v0 }
 0xdb1   :  { %2860 = vmatpush3.msra.mxu0 %v3199_v9 }
 0xdb2   :  { %2861 = vmatprep.subr.mxu0 %v3091_v0 }
 0xdb3   :  { %2862 = vmatpush3.msra.mxu0 %v3208_v10 }
 0xdb4   :  { %2863 = vmatprep.subr.mxu0 %v3091_v0 }
 0xdb5   :  { %2864 = vmatpush3.msra.mxu0 %v3215_v11 }
 0xdb6   :  { %2866 = vmatmul.mubr.msk.f32.vlgmr.msra.gmra.mxu0 %vm218_vm3, %v1514_v14  ;;  %2879 = vmatprep.subr.mxu0 %v3091_v0 }
 0xdb7   :  { %2880 = vmatpush3.msra.mxu0 %v3149_v1  ;;  %2887 = vmatprep.mubr.msk.f32.mxu0 %vm3092_vm1, %v3091_v0 }
 0xdb8   :  { %2881 = vmatprep.subr.mxu0 %v3091_v0 }
 0xdb9   :  { %2882 = vmatpush3.msra.mxu0 %v3154_v2  ;;  %v170_v2 = vadd.f32 %v3329_v47, %v3239_v15 }
 0xdba   :  { %2883 = vmatprep.subr.mxu0 %v3091_v0 }
 0xdbb   :  { %2884 = vmatpush3.msra.mxu0 %v3169_v5 }
 0xdbc   :  { %2885 = vmatprep.subr.mxu0 %v3091_v0 }
 0xdbd   :  { %2886 = vmatpush3.msra.mxu0 %v3181_v7 }
 0xdbe   :  { %2901 = vmatprep.subr.mxu0 %v3091_v0 }
 0xe66   :  { %v1412_v8 = vpop.f32.mrf.mxu0 }
 0xe68   :  { %v2823_v9 = vpop.f32.mrf.mxu0 }
 0xe6e   :  { %v1583_v1 = vpop.f32.mrf.mxu0 }
 0xe6f   :  { %v1584_v17 = vadd.f32 %v1583_v1, %v1412_v8 }
 0xe70   :  { %v2845_v18 = vpop.f32.mrf.mxu0 }
 0xe71   :  { %v1587_v20 = vadd.f32 %v3340_v51, %v1584_v17 }
 0xe73   :  { %3021 = vtanh.f32 %v1587_v20  ;;  %v2518_v24 = vmul.f32 -1.442695, %v1587_v20 }
 0xe76   :  { %v1764_v19 = vpop.f32.mrf.mxu0 }
 0xe77   :  { %v1768_v21 = vadd.f32 %v1764_v19, %v170_v2 }
 0xe78   :  { %v2867_v5 = vpop.f32.mrf.mxu0 }
 0xe79   :  { %3023 = vtanh.f32 %v1768_v21  ;;  %v2522_v26 = vmul.f32 -1.442695, %v1768_v21 }
 0xe7a   :  { %3025 = vpow2.f32 %v2518_v24 }
 0xe7b   :  { %3027 = vpow2.f32 %v2522_v26 }
 0xe80   :  { %v3022_v23 = vpop.eup %3021 }
 0xe81   :  { %1597 = vrot.lane.b32.xlu0 %v3022_v23, %s3093_s11 }
 0xe86   :  { %v3024_v7 = vpop.eup %3023 }
 0xe87   :  { %1778 = vrot.lane.b32.xlu1 %v3024_v7, %s3093_s11  ;;  %v3026_v25 = vpop.eup %3025 }
 0xe88   :  { %v1591_v27 = vadd.f32 1.0, %v3026_v25  ;;  %v3028_v28 = vpop.eup %3027 }
 0xe89   :  { %v1772_v31 = vadd.f32 1.0, %v3028_v28 }
 0xe8a   :  { %3029 = vrcp.f32 %v1591_v27 }
 0xe8b   :  { %3031 = vrcp.f32 %v1772_v31 }
 0xe97   :  { %v3030_v47 = vpop.eup %3029 }
 0xe98   :  { %v3032_v35 = vpop.eup %3031  ;;  %v1595_v40 = vmul.f32 %v3030_v47, %v3515_v59 }
 0xe99   :  { %v1776_v43 = vmul.f32 %v3032_v35, %v3519_v62 }
 0xef3   :  { %v1598_v32 = vpop.permute.xlu0 %1597 }
 0xef4   :  { %v1600_v30 = vmul.f32 %v3030_v47, %v1598_v32 }
 0xef6   :  { %1602 = vrot.lane.b32.xlu0 %v1600_v30, %s3093_s11 }
 0xef9   :  { %v1779_v37 = vpop.permute.xlu1 %1778 }
 0xefa   :  { %v1781_v38 = vmul.f32 %v3032_v35, %v1779_v37 }
 0xefc   :  { %1783 = vrot.lane.b32.xlu1 %v1781_v38, %s3093_s11 }
 0xf68   :  { %v1603_v41 = vpop.permute.xlu0 %1602 }
 0xf69   :  { %v3570_v42 = vadd.f32 %v1603_v41, %v1595_v40  ;;  %v3661_v40 = vld [vmem:[%s3794_s4 + $0x18] sm:$0xff]  ;;  %v3670_v41 = vld [vmem:[%s3794_s4 + $0x10] sm:$0xff] }
 0xf6b   :  { %3033 = vtanh.f32 %v3570_v42 }
 0xf6e   :  { %v1784_v44 = vpop.permute.xlu1 %1783 }
 0xf6f   :  { %v3574_v52 = vadd.f32 %v1784_v44, %v1776_v43  ;;  %v3684_v44 = vld [vmem:[%s3794_s4] sm:$0xff] }
 0xf71   :  { %3035 = vtanh.f32 %v3574_v52 }
 0xf78   :  { %v3034_v48 = vpop.eup %3033 }
 0xf79   :  { %1608 = vrot.lane.b32.xlu0 %v3034_v48, %s3093_s11  ;;  %v3088_v48 = vld [vmem:[%s3792_s2] sm:$0xff] }
 0xf7e   :  { %v3036_v53 = vpop.eup %3035 }
 0xf7f   :  { %1789 = vrot.lane.b32.xlu1 %v3036_v53, %s3093_s11 }
 0xfeb   :  { %v1609_v54 = vpop.permute.xlu0 %1608 }
 0xfec   :  { %v3579_v55 = vmul.f32 %v3030_v47, %v1609_v54 }
 0xfee   :  { %1623 = vrot.lane.b32.xlu0 %v3579_v55, %s3094_s10 }
 0xff1   :  { %v1790_v56 = vpop.permute.xlu1 %1789 }
 0xff2   :  { %v1792_v57 = vmul.f32 %v3032_v35, %v1790_v56 }
 0xff4   :  { %1794 = vrot.lane.b32.xlu1 %v1792_v57, %s3094_s10 }
0x1060   :  { %v1624_v45 = vpop.permute.xlu0 %1623 }
0x1061   :  { %2855 = vmatmul.mubr.msk.f32.vlgmr.msra.gmra.mxu1 %vm218_vm3, %v1624_v45 }
0x1062   :  { %2869 = vmatpush3.msra.mxu1 %v3256_v33  ;;  %2876 = vmatprep.mubr.msk.f32.mxu1 %vm3092_vm1, %v3091_v0  ;;  %v3599_v33 = vld [vmem:[%s3792_s2 + $0x18] sm:$0xff] }
0x1063   :  { %2870 = vmatprep.subr.mxu1 %v3091_v0 }
0x1064   :  { %2871 = vmatpush3.msra.mxu1 %v3262_v34  ;;  %v3608_v34 = vld [vmem:[%s3792_s2 + $0x10] sm:$0xff] }
0x1065   :  { %2872 = vmatprep.subr.mxu1 %v3091_v0 }
0x1066   :  { %2873 = vmatpush3.msra.mxu1 %v3273_v36  ;;  %v1795_v58 = vpop.permute.xlu1 %1794  ;;  %v3079_v36 = vld [vmem:[%s3789_s5 + $0x18] sm:$0xff] }
0x1067   :  { %2874 = vmatprep.subr.mxu1 %v3091_v0 }
0x1068   :  { %2875 = vmatpush3.msra.mxu1 %v3287_v39  ;;  %v3082_v39 = vld [vmem:[%s3789_s5] sm:$0xff] }
0x1069   :  { %2877 = vmatmul.mubr.msk.f32.vlgmr.msra.gmra.mxu1 %vm218_vm3, %v1795_v58  ;;  %2890 = vmatprep.subr.mxu1 %v3091_v0 }
0x106a   :  { %2891 = vmatpush3.msra.mxu1 %v3599_v33  ;;  %2898 = vmatprep.mubr.msk.f32.mxu1 %vm3092_vm1, %v3091_v0 }
0x106b   :  { %2892 = vmatprep.subr.mxu1 %v3091_v0 }
0x106c   :  { %2893 = vmatpush3.msra.mxu1 %v3608_v34 }
0x106d   :  { %2894 = vmatprep.subr.mxu1 %v3091_v0 }
0x106e   :  { %2895 = vmatpush3.msra.mxu1 %v3208_v10  ;;  %v3080_v10 = vld [vmem:[%s3789_s5 + $0x10] sm:$0xff] }
0x106f   :  { %2896 = vmatprep.subr.mxu1 %v3091_v0 }
0x1070   :  { %2897 = vmatpush3.msra.mxu1 %v3215_v11  ;;  %v3081_v11 = vld [vmem:[%s3789_s5 + $0x8] sm:$0xff] }
0x1071   :  { %2899 = vmatmul.mubr.msk.f32.vlgmr.msra.gmra.mxu1 %vm218_vm3, %v1795_v58  ;;  %2912 = vmatprep.subr.mxu1 %v3091_v0 }
0x1072   :  { %2913 = vmatpush3.msra.mxu1 %v3079_v36  ;;  %2920 = vmatprep.mubr.msk.f32.mxu1 %vm3092_vm1, %v3091_v0 }
0x1073   :  { %2914 = vmatprep.subr.mxu1 %v3091_v0 }
0x1074   :  { %2915 = vmatpush3.msra.mxu1 %v3080_v10 }
0x1075   :  { %2916 = vmatprep.subr.mxu1 %v3091_v0 }
0x1076   :  { %2917 = vmatpush3.msra.mxu1 %v3081_v11 }
0x1077   :  { %2918 = vmatprep.subr.mxu1 %v3091_v0 }
0x1078   :  { %2919 = vmatpush3.msra.mxu1 %v3082_v39 }
0x1079   :  { %2934 = vmatprep.subr.mxu1 %v3091_v0 }
0x1121   :  { %v1693_v59 = vpop.f32.mrf.mxu1 }
0x1123   :  { %v2856_v60 = vpop.f32.mrf.mxu1 }
0x1129   :  { %v1864_v61 = vpop.f32.mrf.mxu1 }
0x112a   :  { %v1865_v62 = vadd.f32 %v1864_v61, %v1693_v59 }
0x112b   :  { %v2878_v46 = vpop.f32.mrf.mxu1 }
0x112c   :  { %v1868_v63 = vadd.f32 %v3340_v51, %v1865_v62 }
0x112e   :  { %3037 = vtanh.f32 %v1868_v63  ;;  %v2524_v9 = vmul.f32 -1.442695, %v1868_v63 }
0x1131   :  { %v2045_v6 = vpop.f32.mrf.mxu1 }
0x1132   :  { %v2049_v13 = vadd.f32 %v2045_v6, %v175_v4 }
0x1133   :  { %v2900_v12 = vpop.f32.mrf.mxu1 }
0x1134   :  { %3039 = vtanh.f32 %v2049_v13  ;;  %v2528_v1 = vmul.f32 -1.442695, %v2049_v13 }
0x1135   :  { %3041 = vpow2.f32 %v2524_v9 }
0x1136   :  { %3043 = vpow2.f32 %v2528_v1 }
0x113b   :  { %v3038_v14 = vpop.eup %3037 }
0x113c   :  { %1878 = vrot.lane.b32.xlu0 %v3038_v14, %s3093_s11 }
0x1141   :  { %v3040_v8 = vpop.eup %3039 }
0x1142   :  { %2059 = vrot.lane.b32.xlu1 %v3040_v8, %s3093_s11  ;;  %v3042_v17 = vpop.eup %3041 }
0x1143   :  { %v1872_v18 = vadd.f32 1.0, %v3042_v17  ;;  %v3044_v20 = vpop.eup %3043 }
0x1144   :  { %v2053_v2 = vadd.f32 1.0, %v3044_v20 }
0x1145   :  { %3045 = vrcp.f32 %v1872_v18 }
0x1146   :  { %3047 = vrcp.f32 %v2053_v2 }
0x1152   :  { %v3046_v15 = vpop.eup %3045 }
0x1153   :  { %v3048_v21 = vpop.eup %3047  ;;  %v1876_v7 = vmul.f32 %v3046_v15, %v3570_v42  ;;  %v3677_v42 = vld [vmem:[%s3794_s4 + $0x8] sm:$0xff] }
0x1154   :  { %v2057_v25 = vmul.f32 %v3048_v21, %v3574_v52  ;;  %v3087_v52 = vld [vmem:[%s3792_s2 + $0x8] sm:$0xff] }
0x11ae   :  { %v1879_v50 = vpop.permute.xlu0 %1878 }
0x11af   :  { %v1881_v19 = vmul.f32 %v3046_v15, %v1879_v50 }
0x11b1   :  { %1883 = vrot.lane.b32.xlu0 %v1881_v19, %s3093_s11 }
0x11b4   :  { %v2060_v5 = vpop.permute.xlu1 %2059 }
0x11b5   :  { %v2062_v23 = vmul.f32 %v3048_v21, %v2060_v5 }
0x11b7   :  { %2064 = vrot.lane.b32.xlu1 %v2062_v23, %s3093_s11 }
0x1223   :  { %v1884_v24 = vpop.permute.xlu0 %1883 }
0x1224   :  { %v3643_v26 = vadd.f32 %v1884_v24, %v1876_v7 }
0x1226   :  { %3049 = vtanh.f32 %v3643_v26 }
0x1229   :  { %v2065_v27 = vpop.permute.xlu1 %2064 }
0x122a   :  { %v3647_v28 = vadd.f32 %v2065_v27, %v2057_v25 }
0x122c   :  { %3051 = vtanh.f32 %v3647_v28 }
0x1233   :  { %v3050_v31 = vpop.eup %3049 }
0x1234   :  { %1889 = vrot.lane.b32.xlu0 %v3050_v31, %s3093_s11  ;;  %v3090_v31 = vld [vmem:[%s3795_s6] ss:$0 sm:$0xff] }
0x1239   :  { %v3052_v47 = vpop.eup %3051 }
0x123a   :  { %2070 = vrot.lane.b32.xlu1 %v3052_v47, %s3093_s11 }
0x12a6   :  { %v1890_v32 = vpop.permute.xlu0 %1889 }
0x12a7   :  { %v3652_v30 = vmul.f32 %v3046_v15, %v1890_v32 }
0x12a9   :  { %1904 = vrot.lane.b32.xlu0 %v3652_v30, %s3094_s10 }
0x12ac   :  { %v2071_v35 = vpop.permute.xlu1 %2070 }
0x12ad   :  { %v2073_v37 = vmul.f32 %v3048_v21, %v2071_v35  ;;  %v2507_v35 = vld [vmem:[%s3796_s7 + $0x2] ss:$0 sm:$0xff] }
0x12af   :  { %2075 = vrot.lane.b32.xlu1 %v2073_v37, %s3094_s10  ;;  %v2519_v37 = vld [vmem:[%s3796_s7 + $0x4] ss:$0 sm:$0xff] }
0x131b   :  { %v1905_v38 = vpop.permute.xlu0 %1904 }
0x131c   :  { %2888 = vmatmul.mubr.msk.f32.vlgmr.msra.gmra.mxu0 %vm218_vm3, %v1905_v38  ;;  %v2531_v38 = vld [vmem:[%s3796_s7 + $0x6] ss:$0 sm:$0xff] }
0x131d   :  { %2902 = vmatpush3.msra.mxu0 %v3661_v40  ;;  %2909 = vmatprep.mubr.msk.f32.mxu0 %vm3092_vm1, %v3091_v0 }
0x131e   :  { %2903 = vmatprep.subr.mxu0 %v3091_v0 }
0x131f   :  { %2904 = vmatpush3.msra.mxu0 %v3670_v41 }
0x1320   :  { %2905 = vmatprep.subr.mxu0 %v3091_v0 }
0x1321   :  { %2906 = vmatpush3.msra.mxu0 %v3677_v42  ;;  %v2076_v43 = vpop.permute.xlu1 %2075 }
0x1322   :  { %2907 = vmatprep.subr.mxu0 %v3091_v0 }
0x1323   :  { %2908 = vmatpush3.msra.mxu0 %v3684_v44 }
0x1324   :  { %2910 = vmatmul.mubr.msk.f32.vlgmr.msra.gmra.mxu0 %vm218_vm3, %v2076_v43  ;;  %2923 = vmatprep.subr.mxu0 %v3091_v0 }
0x1325   :  { %2924 = vmatpush3.msra.mxu0 %v3599_v33  ;;  %2931 = vmatprep.mubr.msk.f32.mxu0 %vm3092_vm1, %v3091_v0  ;;  %v3089_v33 = vld [vmem:[%s3793_s3] ss:$0 sm:$0xff] }
0x1326   :  { %2925 = vmatprep.subr.mxu0 %v3091_v0 }
0x1327   :  { %2926 = vmatpush3.msra.mxu0 %v3608_v34  ;;  %v180_v34 = vadd.f32 %v3089_v33, %v3333_v49 }
0x1328   :  { %2927 = vmatprep.subr.mxu0 %v3091_v0 }
0x1329   :  { %2928 = vmatpush3.msra.mxu0 %v3087_v52 }
0x132a   :  { %2929 = vmatprep.subr.mxu0 %v3091_v0 }
0x132b   :  { %2930 = vmatpush3.msra.mxu0 %v3088_v48  ;;  %v2501_v48 = vld [vmem:[%s3796_s7 + $0x1] ss:$0 sm:$0xff] }
0x132c   :  { %2932 = vmatmul.mubr.msk.f32.vlgmr.msra.gmra.mxu0 %vm218_vm3, %v2076_v43 }
0x13dc   :  { %v1974_v53 = vpop.f32.mrf.mxu0 }
0x13de   :  { %v2889_v54 = vpop.f32.mrf.mxu0 }
0x13df   :  { %v2513_v54 = vld [vmem:[%s3796_s7 + $0x3] ss:$0 sm:$0xff] }
0x13e4   :  { %v2145_v56 = vpop.f32.mrf.mxu0 }
0x13e5   :  { %v2146_v57 = vadd.f32 %v2145_v56, %v1974_v53  ;;  %v2537_v53 = vld [vmem:[%s3796_s7 + $0x7] ss:$0 sm:$0xff]  ;;  %v2525_v56 = vld [vmem:[%s3796_s7 + $0x5] ss:$0 sm:$0xff] }
0x13e6   :  { %v2911_v45 = vpop.f32.mrf.mxu0 }
0x13e7   :  { %v2149_v58 = vadd.f32 %v3340_v51, %v2146_v57 }
0x13e9   :  { %3053 = vtanh.f32 %v2149_v58  ;;  %v2530_v60 = vmul.f32 -1.442695, %v2149_v58 }
0x13ec   :  { %v2326_v36 = vpop.f32.mrf.mxu0 }
0x13ed   :  { %v2330_v10 = vadd.f32 %v2326_v36, %v180_v34 }
0x13ee   :  { %v2933_v11 = vpop.f32.mrf.mxu0 }
0x13ef   :  { %3055 = vtanh.f32 %v2330_v10  ;;  %v2534_v51 = vmul.f32 -1.442695, %v2330_v10 }
0x13f0   :  { %3057 = vpow2.f32 %v2530_v60 }
0x13f1   :  { %3059 = vpow2.f32 %v2534_v51 }
0x13f6   :  { %v3054_v39 = vpop.eup %3053 }
0x13f7   :  { %2159 = vrot.lane.b32.xlu0 %v3054_v39, %s3093_s11 }
0x13fc   :  { %v3056_v59 = vpop.eup %3055 }
0x13fd   :  { %2340 = vrot.lane.b32.xlu1 %v3056_v59, %s3093_s11  ;;  %v3058_v61 = vpop.eup %3057 }
0x13fe   :  { %v2153_v62 = vadd.f32 1.0, %v3058_v61  ;;  %v3060_v46 = vpop.eup %3059 }
0x13ff   :  { %v2334_v63 = vadd.f32 1.0, %v3060_v46 }
0x1400   :  { %3061 = vrcp.f32 %v2153_v62 }
0x1401   :  { %3063 = vrcp.f32 %v2334_v63 }
0x140d   :  { %v3062_v49 = vpop.eup %3061 }
0x140e   :  { %v3064_v13 = vpop.eup %3063  ;;  %v2157_v8 = vmul.f32 %v3062_v49, %v3643_v26 }
0x140f   :  { %v2338_v17 = vmul.f32 %v3064_v13, %v3647_v28 }
0x1469   :  { %v2160_v4 = vpop.permute.xlu0 %2159 }
0x146a   :  { %v2162_v6 = vmul.f32 %v3062_v49, %v2160_v4 }
0x146c   :  { %2164 = vrot.lane.b32.xlu0 %v2162_v6, %s3093_s11 }
0x146f   :  { %v2341_v12 = vpop.permute.xlu1 %2340 }
0x1470   :  { %v2343_v14 = vmul.f32 %v3064_v13, %v2341_v12 }
0x1472   :  { %2345 = vrot.lane.b32.xlu1 %v2343_v14, %s3093_s11 }
0x14de   :  { %v2165_v9 = vpop.permute.xlu0 %2164 }
0x14df   :  { %v3713_v1 = vadd.f32 %v2165_v9, %v2157_v8 }
0x14e1   :  { %3065 = vtanh.f32 %v3713_v1 }
0x14e4   :  { %v2346_v18 = vpop.permute.xlu1 %2345 }
0x14e5   :  { %v2348_v20 = vadd.f32 %v2346_v18, %v2338_v17 }
0x14e7   :  { %3067 = vtanh.f32 %v2348_v20 }
0x14ee   :  { %v3066_v2 = vpop.eup %3065 }
0x14ef   :  { %2170 = vrot.lane.b32.xlu0 %v3066_v2, %s3093_s11 }
0x14f4   :  { %v3068_v15 = vpop.eup %3067 }
0x14f5   :  { %2351 = vrot.lane.b32.xlu1 %v3068_v15, %s3093_s11 }
0x1561   :  { %v2171_v50 = vpop.permute.xlu0 %2170 }
0x1562   :  { %v3719_v19 = vmul.f32 %v3062_v49, %v2171_v50 }
0x1564   :  { %2185 = vrot.lane.b32.xlu0 %v3719_v19, %s3094_s10 }
0x1567   :  { %v2352_v21 = vpop.permute.xlu1 %2351 }
0x1568   :  { %v2354_v5 = vmul.f32 %v3064_v13, %v2352_v21 }
0x156a   :  { %2356 = vrot.lane.b32.xlu1 %v2354_v5, %s3094_s10 }
0x15d6   :  { %v2186_v23 = vpop.permute.xlu0 %2185 }
0x15d7   :  { %2921 = vmatmul.mubr.msk.f32.vlgmr.msra.gmra.mxu1 %vm218_vm3, %v2186_v23 }
0x15d8   :  { %2935 = vmatpush3.msra.mxu1 %v3661_v40  ;;  %2942 = vmatprep.mubr.msk.f32.mxu1 %vm3092_vm1, %v3091_v0 }
0x15d9   :  { %2936 = vmatprep.subr.mxu1 %v3091_v0 }
0x15da   :  { %2937 = vmatpush3.msra.mxu1 %v3670_v41 }
0x15db   :  { %2938 = vmatprep.subr.mxu1 %v3091_v0 }
0x15dc   :  { %2939 = vmatpush3.msra.mxu1 %v3677_v42  ;;  %v2357_v7 = vpop.permute.xlu1 %2356 }
0x15dd   :  { %2940 = vmatprep.subr.mxu1 %v3091_v0  ;;  %v2495_v0 = vld [vmem:[%s3796_s7] ss:$0 sm:$0xff] }
0x15de   :  { %2941 = vmatpush3.msra.mxu1 %v3684_v44 }
0x15df   :  { %2943 = vmatmul.mubr.msk.f32.vlgmr.msra.gmra.mxu1 %vm218_vm3, %v2357_v7 }
0x1697   :  { %v2255_v24 = vpop.f32.mrf.mxu1 }
0x1699   :  { %v2922_v26 = vpop.f32.mrf.mxu1 }
0x169f   :  { %v2426_v25 = vpop.f32.mrf.mxu1 }
0x16a0   :  { %v2427_v27 = vadd.f32 %v2426_v25, %v2255_v24 }
0x16a1   :  { %v2944_v28 = vpop.f32.mrf.mxu1 }
0x16a2   :  { %v2430_v47 = vadd.f32 %v3090_v31, %v2427_v27 }
0x16a4   :  { %3069 = vtanh.f32 %v2430_v47  ;;  %v2536_v40 = vmul.f32 -1.442695, %v2430_v47 }
0x16a6   :  { %3071 = vpow2.f32 %v2536_v40 }
0x16b1   :  { %v3070_v32 = vpop.eup %3069 }
0x16b2   :  { %2440 = vrot.lane.b32.xlu0 %v3070_v32, %s3093_s11 }
0x16b3   :  { %v3072_v41 = vpop.eup %3071 }
0x16b4   :  { %v2434_v42 = vadd.f32 1.0, %v3072_v41 }
0x16b6   :  { %493 = vrot.lane.b32.xlu0 %v2495_v0, %s3094_s10  ;;  %3073 = vrcp.f32 %v2434_v42 }
0x16ba   :  { %1055 = vrot.lane.b32.xlu0 %v2507_v35, %s3094_s10 }
0x16be   :  { %1617 = vrot.lane.b32.xlu0 %v2519_v37, %s3094_s10 }
0x16c2   :  { %2179 = vrot.lane.b32.xlu0 %v2531_v38, %s3094_s10 }
0x16c3   :  { %v3074_v43 = vpop.eup %3073 }
0x16c4   :  { %v2438_v57 = vmul.f32 %v3074_v43, %v3713_v1 }
0x16c6   :  { %2460 = vrot.lane.b32.xlu0 %v2537_v53, %s3094_s10 }
0x1724   :  { %v2441_v44 = vpop.permute.xlu0 %2440 }
0x1725   :  { %v2443_v52 = vmul.f32 %v3074_v43, %v2441_v44 }
0x1727   :  { %2445 = vrot.lane.b32.xlu1 %v2443_v52, %s3093_s11 }
0x1728   :  { %v494_v34 = vpop.permute.xlu0 %493 }
0x1729   :  { %v496_v11 = vmul.f32 %v494_v34, %v3359_v29 }
0x172b   :  { %774 = vrot.lane.b32.xlu1 %v2501_v48, %s3094_s10 }
0x172c   :  { %v1056_v39 = vpop.permute.xlu0 %1055 }
0x172d   :  { %v1058_v51 = vmul.f32 %v1056_v39, %v3469_v16 }
0x172f   :  { %1336 = vrot.lane.b32.xlu1 %v2513_v54, %s3094_s10 }
0x1730   :  { %v1618_v46 = vpop.permute.xlu0 %1617 }
0x1731   :  { %v1620_v4 = vmul.f32 %v1618_v46, %v3579_v55  ;;  %v2473_v55 = vstv %s3797_s8 }
0x1733   :  { %1898 = vrot.lane.b32.xlu1 %v2525_v56, %s3094_s10 }
0x1734   :  { %v2180_v12 = vpop.permute.xlu0 %2179 }
0x1735   :  { %v2182_v8 = vmul.f32 %v2180_v12, %v3719_v19 }
0x1738   :  { %v2461_v29 = vpop.permute.xlu0 %2460 }
0x1799   :  { %v2446_v45 = vpop.permute.xlu1 %2445 }
0x179a   :  { %v2448_v58 = vadd.f32 %v2446_v45, %v2438_v57 }
0x179c   :  { %3075 = vtanh.f32 %v2448_v58 }
0x179d   :  { %v775_v36 = vpop.permute.xlu1 %774 }
0x179e   :  { %v777_v10 = vmul.f32 %v775_v36, %v3414_v22 }
0x17a0   :  { %v778_v59 = vadd.f32 %v777_v10, %v496_v11 }
0x17a1   :  { %v1337_v60 = vpop.permute.xlu1 %1336 }
0x17a2   :  { %v1059_v61 = vadd.f32 %v1058_v51, %v778_v59  ;;  %v1339_v62 = vmul.f32 %v1337_v60, %v3524_v3 }
0x17a4   :  { %v1340_v63 = vadd.f32 %v1339_v62, %v1059_v61 }
0x17a5   :  { %v1899_v49 = vpop.permute.xlu1 %1898 }
0x17a6   :  { %v1621_v6 = vadd.f32 %v1620_v4, %v1340_v63  ;;  %v1901_v13 = vmul.f32 %v1899_v49, %v3652_v30 }
0x17a8   :  { %v1902_v22 = vadd.f32 %v1901_v13, %v1621_v6 }
0x17a9   :  { %v3076_v33 = vpop.eup %3075 }
0x17aa   :  { %2451 = vrot.lane.b32.xlu1 %v3076_v33, %s3093_s11  ;;  %v2183_v1 = vadd.f32 %v2182_v8, %v1902_v22 }
0x181c   :  { %v2452_v14 = vpop.permute.xlu1 %2451 }
0x181d   :  { %v2454_v9 = vmul.f32 %v3074_v43, %v2452_v14 }
0x181f   :  { %v2463_v16 = vmul.f32 %v2461_v29, %v2454_v9 }
0x1821   :  { %v2464_v17 = vadd.f32 %v2463_v16, %v2183_v1 }
0x1823   :  { %2466 = vrot.lane.b32.xlu1 %v2464_v17, %s3094_s10 }
0x1895   :  { %v2467_v3 = vpop.permute.xlu1 %2466 }
0x1896   :  { %v2469_v18 = vsel %vm218_vm3, %v2467_v3, 0.0 }
0x1897   :  { %2470 = vadd.xlane.f32.xlu0 %v2469_v18 }
0x1920   :  { %v2471_v30 = vpop.xlane.xlu0 %2470 }
0x1921   :  { %v2474_v20 = vadd.f32 %v2473_v55, %v2471_v30 }
0x1923   :  { %2476 = vst.msk [vmem:[%s3798_s9] sm:$0xff] %vm2475_vm4, %v2474_v20 }

</bundles_post_ra>
